<compile_context>
chip_gen: v7x
topology: tpu7x:2x2x1
jax: 0.10.0
libtpu: 0.0.40
codegen_flags: <defaults>
</compile_context>

<pallas_src>
import functools

import jax
import jax.numpy as jnp
from jax.experimental import pallas as pl
from jax.experimental.pallas import tpu as pltpu

_PAD_TOP = 8  # aligned sublane offset of the interior rows in the padded scratch


def sepconv_kernel(x_ref, b1_ref, wdw_ref, b2_ref, scale_ref, bias_ref,
                   o_ref, pad_ref, *, H, W, C, M, KH, KW, ph, pw, nb, nfold,
                   matmul_dtype):
    # x_ref:   (nb, H, W*C)             VMEM   merged-lane input block
    # b1_ref:  (W*C, W*M)               VMEM   block-diagonal pwconv1 weight (bf16/f32)
    # wdw_ref: (KH*KW, 8, W*M)          VMEM   pre-broadcast, column-masked taps (f32)
    # b2_ref:  (W*M, W*C)               VMEM   block-diagonal pwconv2 weight (bf16/f32)
    # scale_ref, bias_ref: (1,)         SMEM   StarReLU scalars
    # o_ref:   (nb, H//nfold, nfold*W*C) VMEM  lane-dense output block
    # pad_ref: (_PAD_TOP + H + 8, W*M)  VMEM   H-padded activation scratch
    WC, WM = W * C, W * M
    TOP = _PAD_TOP
    rows = nb * H
    chunk = H // nfold
    nh = H // 8

    # ---- pwconv1: ONE MXU matmul over all nb*H rows (better MXU row fill) ----
    lhs = x_ref[...].reshape(rows, WC)                 # merged-lane, lane-dense
    if matmul_dtype is not None:
        lhs = lhs.astype(matmul_dtype)                 # bf16 operands, f32 accumulate
    h_all = jnp.dot(lhs, b1_ref[...], preferred_element_type=jnp.float32)  # (rows, WM)

    # ---- StarReLU: s * relu(h)^2 + b  (f32 on the VPU) -----------------------
    s = scale_ref[0]
    b = bias_ref[0]
    r = jnp.maximum(h_all, 0.0)
    h_all = s * (r * r) + b

    # ---- depthwise KHxKW conv: kx-outer / ky-inner shift-and-accumulate ------
    # Halo borders are re-zeroed every grid step (they are never overwritten by
    # the per-kx interior stores below), so megacore / "parallel" splitting of
    # the batch grid axis stays safe.
    zeros8 = jnp.zeros((8, WM), jnp.float32)
    pad_ref[0:8, :] = zeros8
    pad_ref[TOP + H:TOP + H + 8, :] = zeros8

    acc_parts = []
    for i in range(nb):
        h = h_all[i * H:(i + 1) * H, :]                # (H, WM), 8-aligned row slice
        # Accumulate in (8, WM) sublane tiles so each tap weight is a single
        # pre-broadcast vreg -> no in-kernel broadcast_in_dim at all.
        acc_blk = [jnp.zeros((8, WM), jnp.float32) for _ in range(nh)]
        for kx in range(KW):
            dx = kx - pw
            # ONE lane roll per kx (hoisted out of the ky loop; 6 rolls/image,
            # previously 42).  Wrapped lanes are killed by the pre-masked taps.
            rolled = h if dx == 0 else pltpu.roll(h, (-dx * M) % WM, axis=1)
            pad_ref[TOP:TOP + H, :] = rolled           # aligned interior store
            for ky in range(KH):
                w8 = wdw_ref[ky * KW + kx]             # (8, WM) tap tile, no broadcast
                base = TOP - ph + ky
                for hb in range(nh):
                    # Strip starts are not 8-aligned (base = 5..11); the vld path
                    # has slack after the roll hoist, so the sublane-offset loads
                    # are accepted rather than re-derived via roll(axis=0).
                    strip = pad_ref[base + hb * 8: base + hb * 8 + 8, :]
                    acc_blk[hb] = acc_blk[hb] + w8 * strip
        acc_i = acc_blk[0] if nh == 1 else jnp.concatenate(acc_blk, axis=0)
        acc_parts.append(acc_i)
    acc_all = acc_parts[0] if nb == 1 else jnp.concatenate(acc_parts, axis=0)

    # ---- pwconv2: ONE MXU matmul over all rows, then lane-fold the output ----
    a = acc_all
    if matmul_dtype is not None:
        a = a.astype(matmul_dtype)
    y_all = jnp.dot(a, b2_ref[...], preferred_element_type=jnp.float32)   # (rows, WC)
    for i in range(nb):
        if nfold == 1:
            out_i = y_all[i * H:(i + 1) * H, :]
        else:
            out_i = jnp.concatenate(
                [y_all[i * H + u * chunk: i * H + (u + 1) * chunk, :]
                 for u in range(nfold)], axis=1)
        o_ref[i] = out_i.astype(o_ref.dtype)           # >=128-lane, lane-dense store


def sepconv_forward(x, w1, dw, w2, act_scale, act_bias, *, padding=(3, 3),
                    matmul_dtype=jnp.bfloat16):
    """x: (B, H, W, C) NHWC.  Weights in PyTorch layouts:
         w1: (M, C)         = pwconv1.weight
         dw: (M, 1, KH, KW) = dwconv.weight (depthwise)
         w2: (C, M)         = pwconv2.weight
       act_scale/act_bias: (1,) StarReLU parameters.  Returns (B, H, W, C).
       matmul_dtype: dtype of the MXU operands (bf16 default; None -> f32)."""
    B, H, W, C = x.shape
    M = w1.shape[0]
    KH, KW = dw.shape[2], dw.shape[3]
    ph, pw = padding
    WC, WM = W * C, W * M
    assert H % 8 == 0, "H must be a multiple of 8 (sublane tile)"
    assert ph <= _PAD_TOP and (KH - 1 - ph) <= 8, "pad scratch sized for pad<=8"

    # --- one-time parameter re-layout (cache these in a real model) ----------
    f32 = jnp.float32
    wdt = f32 if matmul_dtype is None else matmul_dtype
    eye_w = jnp.eye(W, dtype=f32)
    # Block-diagonal pointwise weights for the merged (H, W*channels) layout,
    # cast to the MXU operand dtype wrapper-side (halves VMEM blocks / DMA bytes).
    b1 = jnp.einsum('xz,cm->xczm', eye_w, w1.T.astype(f32)).reshape(WC, WM).astype(wdt)
    b2 = jnp.einsum('xz,mc->xmzc', eye_w, w2.T.astype(f32)).reshape(WM, WC).astype(wdt)

    # Depthwise taps: tiled over W, column-masked per kx (so roll wraparound is
    # harmless), then pre-broadcast to a full (8, WM) sublane tile per tap so the
    # kernel never emits a broadcast.  Kept f32 (depthwise accumulate is f32).
    dwk = jnp.transpose(dw[:, 0], (1, 2, 0)).astype(f32)              # (KH, KW, M)
    xs = jnp.arange(W)
    dxs = jnp.arange(KW) - pw
    col_ok = ((xs[None, :] + dxs[:, None]) >= 0) & \
             ((xs[None, :] + dxs[:, None]) < W)                       # (KW, W)
    wdw = dwk[:, :, None, :] * col_ok.astype(f32)[None, :, :, None]   # (KH,KW,W,M)
    wdw = wdw.reshape(KH * KW, 1, WM)
    wdw = jnp.broadcast_to(wdw, (KH * KW, 8, WM))                     # (49, 8, WM)

    # merged-lane input view (contiguous reshape, free on the wrapper side)
    x_m = x.reshape(B, H, WC)

    # fold H-chunks into the lane dim until the output block is >=128 lanes,
    # but keep chunk = H//nfold >= 8 (full sublane tiles, non-degenerate matmuls)
    nfold = 1
    while (WC * nfold) % 128 != 0 and H % (nfold * 2) == 0 and H // (nfold * 2) >= 8:
        nfold *= 2
    chunk = H // nfold

    # stack images per grid step when B is large (more MXU rows, fewer steps),
    # but keep >=2 grid steps so both v7x TensorCores get work (B=2 -> nb=1).
    nb = 1
    while B % (nb * 2) == 0 and B // (nb * 2) >= 2 and nb * H < 128:
        nb *= 2
    steps = B // nb

    kernel = functools.partial(
        sepconv_kernel, H=H, W=W, C=C, M=M, KH=KH, KW=KW, ph=ph, pw=pw,
        nb=nb, nfold=nfold, matmul_dtype=matmul_dtype)

    out = pl.pallas_call(
        kernel,
        out_shape=jax.ShapeDtypeStruct((B, chunk, nfold * WC), x.dtype),
        grid_spec=pltpu.PrefetchScalarGridSpec(
            num_scalar_prefetch=0,
            grid=(steps,),
            in_specs=[
                pl.BlockSpec((nb, H, WC), lambda bb: (bb, 0, 0)),
                pl.BlockSpec((WC, WM), lambda bb: (0, 0)),
                pl.BlockSpec((KH * KW, 8, WM), lambda bb: (0, 0, 0)),
                pl.BlockSpec((WM, WC), lambda bb: (0, 0)),
                pl.BlockSpec(memory_space=pltpu.MemorySpace.SMEM),
                pl.BlockSpec(memory_space=pltpu.MemorySpace.SMEM),
            ],
            out_specs=pl.BlockSpec((nb, chunk, nfold * WC), lambda bb: (bb, 0, 0)),
            scratch_shapes=[
                pltpu.VMEM((_PAD_TOP + H + 8, WM), jnp.float32),
            ],
        ),
        compiler_params=pltpu.CompilerParams(
            dimension_semantics=("parallel",),      # >=2 steps -> both v7x cores
            vmem_limit_bytes=32 * 1024 * 1024,      # above the 16 MiB v5e default
        ),
    )(x_m, b1, wdw, b2, act_scale, act_bias)

    # undo the H-chunk fold: (B, H/nfold, nfold*W*C) -> (B, H, W, C)
    # (at realistic sizes, have the consumer take the folded layout instead)
    out = out.reshape(B, chunk, nfold, WC).transpose(0, 2, 1, 3)
    return out.reshape(B, H, W, C)


def sepconv_ref(x, w1, dw, w2, s, b, padding=(3, 3)):
    """Pure-JAX reference, same math as the PyTorch module (NHWC)."""
    B, H, W, C = x.shape
    KH, KW = dw.shape[2], dw.shape[3]
    ph, pw = padding
    h = x @ w1.T
    h = s * jnp.maximum(h, 0.0) ** 2 + b
    dw_w = jnp.transpose(dw[:, 0], (1, 2, 0))          # (KH, KW, M)
    hp = jnp.pad(h, ((0, 0), (ph, ph), (pw, pw), (0, 0)))
    acc = jnp.zeros_like(h)
    for ky in range(KH):
        for kx in range(KW):
            acc = acc + hp[:, ky:ky + H, kx:kx + W, :] * dw_w[ky, kx, :]
    return acc @ w2.T


if __name__ == "__main__":
    # Small shapes consistent with the module: dim=4, expansion_ratio=2 -> med=8.
    B, H, W, dim = 2, 16, 16, 4
    expansion_ratio = 2
    med = int(expansion_ratio * dim)
    KH = KW = 7

    key = jax.random.PRNGKey(0)
    k1, k2, k3, k4 = jax.random.split(key, 4)

    x = jax.random.normal(k1, (B, H, W, dim), jnp.float32)

    # PyTorch-layout parameters.
    w1 = 0.1 * jax.random.normal(k2, (med, dim), jnp.float32)         # pwconv1.weight (out, in)
    dw = 0.1 * jax.random.normal(k3, (med, 1, KH, KW), jnp.float32)   # dwconv.weight (med,1,7,7)
    w2 = 0.1 * jax.random.normal(k4, (dim, med), jnp.float32)         # pwconv2.weight (out, in)
    act_scale = jnp.ones((1,), jnp.float32)   # StarReLU.scale init = 1.0
    act_bias = jnp.zeros((1,), jnp.float32)   # StarReLU.bias  init = 0.0

    ref = sepconv_ref(x, w1, dw, w2, act_scale[0], act_bias[0])

    # Default path: bf16 MXU operands (v6e/v7x fast path), f32 everywhere else.
    out = sepconv_forward(x, w1, dw, w2, act_scale, act_bias)
    jax.block_until_ready(out)
    assert out.shape == (B, H, W, dim)
    assert jnp.allclose(out, ref, atol=5e-3, rtol=5e-2), "bf16-matmul mismatch vs reference"

    # f32 MXU operands: tight structural/numerical check of the kernel.
    out_f32 = sepconv_forward(x, w1, dw, w2, act_scale, act_bias, matmul_dtype=None)
    jax.block_until_ready(out_f32)
    assert jnp.allclose(out_f32, ref, atol=2e-4, rtol=1e-3), "f32 mismatch vs reference"

    print("KERNEL_OK")
</pallas_src>

<mosaic_0001>
module attributes {stable_mosaic.version = 11 : i64} {
  func.func @sepconv_kernel(%arg0: i32, %arg1: memref<1x16x64xf32, #tpu.memory_space<vmem>>, %arg2: memref<64x128xbf16, #tpu.memory_space<vmem>>, %arg3: memref<49x8x128xf32, #tpu.memory_space<vmem>>, %arg4: memref<128x64xbf16, #tpu.memory_space<vmem>>, %arg5: memref<1xf32, #tpu.memory_space<smem>>, %arg6: memref<1xf32, #tpu.memory_space<smem>>, %arg7: memref<1x8x128xf32, #tpu.memory_space<vmem>>, %arg8: memref<32x128xf32, #tpu.memory_space<vmem>>) attributes {dimension_semantics = [#tpu.dimension_semantics<parallel>], iteration_bounds = array<i64: 2>, scalar_prefetch = 0 : i64, scratch_operands = 1 : i64, tpu.core_type = #tpu.core_type<tc>, window_params = [{transform_indices = @transform_0, window_bounds = array<i64: 1, 16, 64>}, {pipeline_mode = #tpu.pipeline_mode<synchronous>, transform_indices = @transform_1, window_bounds = array<i64: 64, 128>}, {pipeline_mode = #tpu.pipeline_mode<synchronous>, transform_indices = @transform_2, window_bounds = array<i64: 49, 8, 128>}, {pipeline_mode = #tpu.pipeline_mode<synchronous>, transform_indices = @transform_3, window_bounds = array<i64: 128, 64>}, {transform_indices = @transform_4, window_bounds = array<i64: 1>}, {transform_indices = @transform_5, window_bounds = array<i64: 1>}, {transform_indices = @transform_6, window_bounds = array<i64: 1, 8, 128>}]} {
    %c0 = arith.constant 0 : index
    %c0_0 = arith.constant 0 : index
    %c0_1 = arith.constant 0 : index
    %0 = vector.load %arg1[%c0, %c0_0, %c0_1] : memref<1x16x64xf32, #tpu.memory_space<vmem>>, vector<1x16x64xf32>
    %1 = vector.shape_cast %0 : vector<1x16x64xf32> to vector<16x64xf32>
    %2 = arith.truncf %1 : vector<16x64xf32> to vector<16x64xbf16>
    %c0_2 = arith.constant 0 : index
    %c0_3 = arith.constant 0 : index
    %3 = vector.load %arg2[%c0_2, %c0_3] : memref<64x128xbf16, #tpu.memory_space<vmem>>, vector<64x128xbf16>
    %cst = arith.constant dense<0.000000e+00> : vector<16x128xf32>
    %4 = tpu.matmul %2, %3, %cst {dimension_numbers = #tpu.dot_dimension_numbers<[1], [0], [0], [1], [0, 0, 1, 1], [], []>} : vector<16x64xbf16>, vector<64x128xbf16>, vector<16x128xf32> -> vector<16x128xf32>
    %c0_4 = arith.constant 0 : index
    %5 = memref.load %arg5[%c0_4] : memref<1xf32, #tpu.memory_space<smem>>
    %c0_5 = arith.constant 0 : index
    %6 = memref.load %arg6[%c0_5] : memref<1xf32, #tpu.memory_space<smem>>
    %cst_6 = arith.constant 0.000000e+00 : f32
    %7 = vector.broadcast %cst_6 : f32 to vector<16x128xf32>
    %8 = arith.maximumf %4, %7 : vector<16x128xf32>
    %9 = arith.mulf %8, %8 : vector<16x128xf32>
    %10 = vector.broadcast %5 : f32 to vector<16x128xf32>
    %11 = arith.mulf %10, %9 : vector<16x128xf32>
    %12 = vector.broadcast %6 : f32 to vector<16x128xf32>
    %13 = arith.addf %11, %12 : vector<16x128xf32>
    %cst_7 = arith.constant 0.000000e+00 : f32
    %14 = vector.broadcast %cst_7 : f32 to vector<8x128xf32>
    %c0_8 = arith.constant 0 : index
    %c0_9 = arith.constant 0 : index
    %15 = vector.load %arg8[%c0_8, %c0_9] : memref<32x128xf32, #tpu.memory_space<vmem>>, vector<8x128xf32>
    tpu.vector_store %arg8[%c0_8, %c0_9], %14 {strides = array<i32>} : memref<32x128xf32, #tpu.memory_space<vmem>>, vector<8x128xf32>,
    %c24 = arith.constant 24 : index
    %c0_10 = arith.constant 0 : index
    %16 = vector.load %arg8[%c24, %c0_10] : memref<32x128xf32, #tpu.memory_space<vmem>>, vector<8x128xf32>
    tpu.vector_store %arg8[%c24, %c0_10], %14 {strides = array<i32>} : memref<32x128xf32, #tpu.memory_space<vmem>>, vector<8x128xf32>,
    %cst_11 = arith.constant 0.000000e+00 : f32
    %17 = vector.broadcast %cst_11 : f32 to vector<8x128xf32>
    %cst_12 = arith.constant 0.000000e+00 : f32
    %18 = vector.broadcast %cst_12 : f32 to vector<8x128xf32>
    %c24_i32 = arith.constant 24 : i32
    %19 = tpu.dynamic_rotate %13 by %c24_i32 dim 1 : vector<16x128xf32>, i32 -> vector<16x128xf32>
    %c8 = arith.constant 8 : index
    %c0_13 = arith.constant 0 : index
    %20 = vector.load %arg8[%c8, %c0_13] : memref<32x128xf32, #tpu.memory_space<vmem>>, vector<16x128xf32>
    tpu.vector_store %arg8[%c8, %c0_13], %19 {strides = array<i32>} : memref<32x128xf32, #tpu.memory_space<vmem>>, vector<16x128xf32>,
    %c0_14 = arith.constant 0 : index
    %c0_15 = arith.constant 0 : index
    %c0_16 = arith.constant 0 : index
    %21 = vector.load %arg3[%c0_14, %c0_15, %c0_16] : memref<49x8x128xf32, #tpu.memory_space<vmem>>, vector<1x8x128xf32>
    %22 = vector.shape_cast %21 : vector<1x8x128xf32> to vector<8x128xf32>
    %c5 = arith.constant 5 : index
    %c0_17 = arith.constant 0 : index
    %23 = vector.load %arg8[%c5, %c0_17] : memref<32x128xf32, #tpu.memory_space<vmem>>, vector<8x128xf32>
    %24 = arith.mulf %22, %23 : vector<8x128xf32>
    %25 = arith.addf %17, %24 : vector<8x128xf32>
    %c13 = arith.constant 13 : index
    %c0_18 = arith.constant 0 : index
    %26 = vector.load %arg8[%c13, %c0_18] : memref<32x128xf32, #tpu.memory_space<vmem>>, vector<8x128xf32>
    %27 = arith.mulf %22, %26 : vector<8x128xf32>
    %28 = arith.addf %18, %27 : vector<8x128xf32>
    %c7 = arith.constant 7 : index
    %c0_19 = arith.constant 0 : index
    %c0_20 = arith.constant 0 : index
    %29 = vector.load %arg3[%c7, %c0_19, %c0_20] : memref<49x8x128xf32, #tpu.memory_space<vmem>>, vector<1x8x128xf32>
    %30 = vector.shape_cast %29 : vector<1x8x128xf32> to vector<8x128xf32>
    %c6 = arith.constant 6 : index
    %c0_21 = arith.constant 0 : index
    %31 = vector.load %arg8[%c6, %c0_21] : memref<32x128xf32, #tpu.memory_space<vmem>>, vector<8x128xf32>
    %32 = arith.mulf %30, %31 : vector<8x128xf32>
    %33 = arith.addf %25, %32 : vector<8x128xf32>
    %c14 = arith.constant 14 : index
    %c0_22 = arith.constant 0 : index
    %34 = vector.load %arg8[%c14, %c0_22] : memref<32x128xf32, #tpu.memory_space<vmem>>, vector<8x128xf32>
    %35 = arith.mulf %30, %34 : vector<8x128xf32>
    %36 = arith.addf %28, %35 : vector<8x128xf32>
    %c14_23 = arith.constant 14 : index
    %c0_24 = arith.constant 0 : index
    %c0_25 = arith.constant 0 : index
    %37 = vector.load %arg3[%c14_23, %c0_24, %c0_25] : memref<49x8x128xf32, #tpu.memory_space<vmem>>, vector<1x8x128xf32>
    %38 = vector.shape_cast %37 : vector<1x8x128xf32> to vector<8x128xf32>
    %c7_26 = arith.constant 7 : index
    %c0_27 = arith.constant 0 : index
    %39 = vector.load %arg8[%c7_26, %c0_27] : memref<32x128xf32, #tpu.memory_space<vmem>>, vector<8x128xf32>
    %40 = arith.mulf %38, %39 : vector<8x128xf32>
    %41 = arith.addf %33, %40 : vector<8x128xf32>
    %c15 = arith.constant 15 : index
    %c0_28 = arith.constant 0 : index
    %42 = vector.load %arg8[%c15, %c0_28] : memref<32x128xf32, #tpu.memory_space<vmem>>, vector<8x128xf32>
    %43 = arith.mulf %38, %42 : vector<8x128xf32>
    %44 = arith.addf %36, %43 : vector<8x128xf32>
    %c21 = arith.constant 21 : index
    %c0_29 = arith.constant 0 : index
    %c0_30 = arith.constant 0 : index
    %45 = vector.load %arg3[%c21, %c0_29, %c0_30] : memref<49x8x128xf32, #tpu.memory_space<vmem>>, vector<1x8x128xf32>
    %46 = vector.shape_cast %45 : vector<1x8x128xf32> to vector<8x128xf32>
    %c8_31 = arith.constant 8 : index
    %c0_32 = arith.constant 0 : index
    %47 = vector.load %arg8[%c8_31, %c0_32] : memref<32x128xf32, #tpu.memory_space<vmem>>, vector<8x128xf32>
    %48 = arith.mulf %46, %47 : vector<8x128xf32>
    %49 = arith.addf %41, %48 : vector<8x128xf32>
    %c16 = arith.constant 16 : index
    %c0_33 = arith.constant 0 : index
    %50 = vector.load %arg8[%c16, %c0_33] : memref<32x128xf32, #tpu.memory_space<vmem>>, vector<8x128xf32>
    %51 = arith.mulf %46, %50 : vector<8x128xf32>
    %52 = arith.addf %44, %51 : vector<8x128xf32>
    %c28 = arith.constant 28 : index
    %c0_34 = arith.constant 0 : index
    %c0_35 = arith.constant 0 : index
    %53 = vector.load %arg3[%c28, %c0_34, %c0_35] : memref<49x8x128xf32, #tpu.memory_space<vmem>>, vector<1x8x128xf32>
    %54 = vector.shape_cast %53 : vector<1x8x128xf32> to vector<8x128xf32>
    %c9 = arith.constant 9 : index
    %c0_36 = arith.constant 0 : index
    %55 = vector.load %arg8[%c9, %c0_36] : memref<32x128xf32, #tpu.memory_space<vmem>>, vector<8x128xf32>
    %56 = arith.mulf %54, %55 : vector<8x128xf32>
    %57 = arith.addf %49, %56 : vector<8x128xf32>
    %c17 = arith.constant 17 : index
    %c0_37 = arith.constant 0 : index
    %58 = vector.load %arg8[%c17, %c0_37] : memref<32x128xf32, #tpu.memory_space<vmem>>, vector<8x128xf32>
    %59 = arith.mulf %54, %58 : vector<8x128xf32>
    %60 = arith.addf %52, %59 : vector<8x128xf32>
    %c35 = arith.constant 35 : index
    %c0_38 = arith.constant 0 : index
    %c0_39 = arith.constant 0 : index
    %61 = vector.load %arg3[%c35, %c0_38, %c0_39] : memref<49x8x128xf32, #tpu.memory_space<vmem>>, vector<1x8x128xf32>
    %62 = vector.shape_cast %61 : vector<1x8x128xf32> to vector<8x128xf32>
    %c10 = arith.constant 10 : index
    %c0_40 = arith.constant 0 : index
    %63 = vector.load %arg8[%c10, %c0_40] : memref<32x128xf32, #tpu.memory_space<vmem>>, vector<8x128xf32>
    %64 = arith.mulf %62, %63 : vector<8x128xf32>
    %65 = arith.addf %57, %64 : vector<8x128xf32>
    %c18 = arith.constant 18 : index
    %c0_41 = arith.constant 0 : index
    %66 = vector.load %arg8[%c18, %c0_41] : memref<32x128xf32, #tpu.memory_space<vmem>>, vector<8x128xf32>
    %67 = arith.mulf %62, %66 : vector<8x128xf32>
    %68 = arith.addf %60, %67 : vector<8x128xf32>
    %c42 = arith.constant 42 : index
    %c0_42 = arith.constant 0 : index
    %c0_43 = arith.constant 0 : index
    %69 = vector.load %arg3[%c42, %c0_42, %c0_43] : memref<49x8x128xf32, #tpu.memory_space<vmem>>, vector<1x8x128xf32>
    %70 = vector.shape_cast %69 : vector<1x8x128xf32> to vector<8x128xf32>
    %c11 = arith.constant 11 : index
    %c0_44 = arith.constant 0 : index
    %71 = vector.load %arg8[%c11, %c0_44] : memref<32x128xf32, #tpu.memory_space<vmem>>, vector<8x128xf32>
    %72 = arith.mulf %70, %71 : vector<8x128xf32>
    %73 = arith.addf %65, %72 : vector<8x128xf32>
    %c19 = arith.constant 19 : index
    %c0_45 = arith.constant 0 : index
    %74 = vector.load %arg8[%c19, %c0_45] : memref<32x128xf32, #tpu.memory_space<vmem>>, vector<8x128xf32>
    %75 = arith.mulf %70, %74 : vector<8x128xf32>
    %76 = arith.addf %68, %75 : vector<8x128xf32>
    %c16_i32 = arith.constant 16 : i32
    %77 = tpu.dynamic_rotate %13 by %c16_i32 dim 1 : vector<16x128xf32>, i32 -> vector<16x128xf32>
    %c8_46 = arith.constant 8 : index
    %c0_47 = arith.constant 0 : index
    %78 = vector.load %arg8[%c8_46, %c0_47] : memref<32x128xf32, #tpu.memory_space<vmem>>, vector<16x128xf32>
    tpu.vector_store %arg8[%c8_46, %c0_47], %77 {strides = array<i32>} : memref<32x128xf32, #tpu.memory_space<vmem>>, vector<16x128xf32>,
    %c1 = arith.constant 1 : index
    %c0_48 = arith.constant 0 : index
    %c0_49 = arith.constant 0 : index
    %79 = vector.load %arg3[%c1, %c0_48, %c0_49] : memref<49x8x128xf32, #tpu.memory_space<vmem>>, vector<1x8x128xf32>
    %80 = vector.shape_cast %79 : vector<1x8x128xf32> to vector<8x128xf32>
    %c5_50 = arith.constant 5 : index
    %c0_51 = arith.constant 0 : index
    %81 = vector.load %arg8[%c5_50, %c0_51] : memref<32x128xf32, #tpu.memory_space<vmem>>, vector<8x128xf32>
    %82 = arith.mulf %80, %81 : vector<8x128xf32>
    %83 = arith.addf %73, %82 : vector<8x128xf32>
    %c13_52 = arith.constant 13 : index
    %c0_53 = arith.constant 0 : index
    %84 = vector.load %arg8[%c13_52, %c0_53] : memref<32x128xf32, #tpu.memory_space<vmem>>, vector<8x128xf32>
    %85 = arith.mulf %80, %84 : vector<8x128xf32>
    %86 = arith.addf %76, %85 : vector<8x128xf32>
    %c8_54 = arith.constant 8 : index
    %c0_55 = arith.constant 0 : index
    %c0_56 = arith.constant 0 : index
    %87 = vector.load %arg3[%c8_54, %c0_55, %c0_56] : memref<49x8x128xf32, #tpu.memory_space<vmem>>, vector<1x8x128xf32>
    %88 = vector.shape_cast %87 : vector<1x8x128xf32> to vector<8x128xf32>
    %c6_57 = arith.constant 6 : index
    %c0_58 = arith.constant 0 : index
    %89 = vector.load %arg8[%c6_57, %c0_58] : memref<32x128xf32, #tpu.memory_space<vmem>>, vector<8x128xf32>
    %90 = arith.mulf %88, %89 : vector<8x128xf32>
    %91 = arith.addf %83, %90 : vector<8x128xf32>
    %c14_59 = arith.constant 14 : index
    %c0_60 = arith.constant 0 : index
    %92 = vector.load %arg8[%c14_59, %c0_60] : memref<32x128xf32, #tpu.memory_space<vmem>>, vector<8x128xf32>
    %93 = arith.mulf %88, %92 : vector<8x128xf32>
    %94 = arith.addf %86, %93 : vector<8x128xf32>
    %c15_61 = arith.constant 15 : index
    %c0_62 = arith.constant 0 : index
    %c0_63 = arith.constant 0 : index
    %95 = vector.load %arg3[%c15_61, %c0_62, %c0_63] : memref<49x8x128xf32, #tpu.memory_space<vmem>>, vector<1x8x128xf32>
    %96 = vector.shape_cast %95 : vector<1x8x128xf32> to vector<8x128xf32>
    %c7_64 = arith.constant 7 : index
    %c0_65 = arith.constant 0 : index
    %97 = vector.load %arg8[%c7_64, %c0_65] : memref<32x128xf32, #tpu.memory_space<vmem>>, vector<8x128xf32>
    %98 = arith.mulf %96, %97 : vector<8x128xf32>
    %99 = arith.addf %91, %98 : vector<8x128xf32>
    %c15_66 = arith.constant 15 : index
    %c0_67 = arith.constant 0 : index
    %100 = vector.load %arg8[%c15_66, %c0_67] : memref<32x128xf32, #tpu.memory_space<vmem>>, vector<8x128xf32>
    %101 = arith.mulf %96, %100 : vector<8x128xf32>
    %102 = arith.addf %94, %101 : vector<8x128xf32>
    %c22 = arith.constant 22 : index
    %c0_68 = arith.constant 0 : index
    %c0_69 = arith.constant 0 : index
    %103 = vector.load %arg3[%c22, %c0_68, %c0_69] : memref<49x8x128xf32, #tpu.memory_space<vmem>>, vector<1x8x128xf32>
    %104 = vector.shape_cast %103 : vector<1x8x128xf32> to vector<8x128xf32>
    %c8_70 = arith.constant 8 : index
    %c0_71 = arith.constant 0 : index
    %105 = vector.load %arg8[%c8_70, %c0_71] : memref<32x128xf32, #tpu.memory_space<vmem>>, vector<8x128xf32>
    %106 = arith.mulf %104, %105 : vector<8x128xf32>
    %107 = arith.addf %99, %106 : vector<8x128xf32>
    %c16_72 = arith.constant 16 : index
    %c0_73 = arith.constant 0 : index
    %108 = vector.load %arg8[%c16_72, %c0_73] : memref<32x128xf32, #tpu.memory_space<vmem>>, vector<8x128xf32>
    %109 = arith.mulf %104, %108 : vector<8x128xf32>
    %110 = arith.addf %102, %109 : vector<8x128xf32>
    %c29 = arith.constant 29 : index
    %c0_74 = arith.constant 0 : index
    %c0_75 = arith.constant 0 : index
    %111 = vector.load %arg3[%c29, %c0_74, %c0_75] : memref<49x8x128xf32, #tpu.memory_space<vmem>>, vector<1x8x128xf32>
    %112 = vector.shape_cast %111 : vector<1x8x128xf32> to vector<8x128xf32>
    %c9_76 = arith.constant 9 : index
    %c0_77 = arith.constant 0 : index
    %113 = vector.load %arg8[%c9_76, %c0_77] : memref<32x128xf32, #tpu.memory_space<vmem>>, vector<8x128xf32>
    %114 = arith.mulf %112, %113 : vector<8x128xf32>
    %115 = arith.addf %107, %114 : vector<8x128xf32>
    %c17_78 = arith.constant 17 : index
    %c0_79 = arith.constant 0 : index
    %116 = vector.load %arg8[%c17_78, %c0_79] : memref<32x128xf32, #tpu.memory_space<vmem>>, vector<8x128xf32>
    %117 = arith.mulf %112, %116 : vector<8x128xf32>
    %118 = arith.addf %110, %117 : vector<8x128xf32>
    %c36 = arith.constant 36 : index
    %c0_80 = arith.constant 0 : index
    %c0_81 = arith.constant 0 : index
    %119 = vector.load %arg3[%c36, %c0_80, %c0_81] : memref<49x8x128xf32, #tpu.memory_space<vmem>>, vector<1x8x128xf32>
    %120 = vector.shape_cast %119 : vector<1x8x128xf32> to vector<8x128xf32>
    %c10_82 = arith.constant 10 : index
    %c0_83 = arith.constant 0 : index
    %121 = vector.load %arg8[%c10_82, %c0_83] : memref<32x128xf32, #tpu.memory_space<vmem>>, vector<8x128xf32>
    %122 = arith.mulf %120, %121 : vector<8x128xf32>
    %123 = arith.addf %115, %122 : vector<8x128xf32>
    %c18_84 = arith.constant 18 : index
    %c0_85 = arith.constant 0 : index
    %124 = vector.load %arg8[%c18_84, %c0_85] : memref<32x128xf32, #tpu.memory_space<vmem>>, vector<8x128xf32>
    %125 = arith.mulf %120, %124 : vector<8x128xf32>
    %126 = arith.addf %118, %125 : vector<8x128xf32>
    %c43 = arith.constant 43 : index
    %c0_86 = arith.constant 0 : index
    %c0_87 = arith.constant 0 : index
    %127 = vector.load %arg3[%c43, %c0_86, %c0_87] : memref<49x8x128xf32, #tpu.memory_space<vmem>>, vector<1x8x128xf32>
    %128 = vector.shape_cast %127 : vector<1x8x128xf32> to vector<8x128xf32>
    %c11_88 = arith.constant 11 : index
    %c0_89 = arith.constant 0 : index
    %129 = vector.load %arg8[%c11_88, %c0_89] : memref<32x128xf32, #tpu.memory_space<vmem>>, vector<8x128xf32>
    %130 = arith.mulf %128, %129 : vector<8x128xf32>
    %131 = arith.addf %123, %130 : vector<8x128xf32>
    %c19_90 = arith.constant 19 : index
    %c0_91 = arith.constant 0 : index
    %132 = vector.load %arg8[%c19_90, %c0_91] : memref<32x128xf32, #tpu.memory_space<vmem>>, vector<8x128xf32>
    %133 = arith.mulf %128, %132 : vector<8x128xf32>
    %134 = arith.addf %126, %133 : vector<8x128xf32>
    %c8_i32 = arith.constant 8 : i32
    %135 = tpu.dynamic_rotate %13 by %c8_i32 dim 1 : vector<16x128xf32>, i32 -> vector<16x128xf32>
    %c8_92 = arith.constant 8 : index
    %c0_93 = arith.constant 0 : index
    %136 = vector.load %arg8[%c8_92, %c0_93] : memref<32x128xf32, #tpu.memory_space<vmem>>, vector<16x128xf32>
    tpu.vector_store %arg8[%c8_92, %c0_93], %135 {strides = array<i32>} : memref<32x128xf32, #tpu.memory_space<vmem>>, vector<16x128xf32>,
    %c2 = arith.constant 2 : index
    %c0_94 = arith.constant 0 : index
    %c0_95 = arith.constant 0 : index
    %137 = vector.load %arg3[%c2, %c0_94, %c0_95] : memref<49x8x128xf32, #tpu.memory_space<vmem>>, vector<1x8x128xf32>
    %138 = vector.shape_cast %137 : vector<1x8x128xf32> to vector<8x128xf32>
    %c5_96 = arith.constant 5 : index
    %c0_97 = arith.constant 0 : index
    %139 = vector.load %arg8[%c5_96, %c0_97] : memref<32x128xf32, #tpu.memory_space<vmem>>, vector<8x128xf32>
    %140 = arith.mulf %138, %139 : vector<8x128xf32>
    %141 = arith.addf %131, %140 : vector<8x128xf32>
    %c13_98 = arith.constant 13 : index
    %c0_99 = arith.constant 0 : index
    %142 = vector.load %arg8[%c13_98, %c0_99] : memref<32x128xf32, #tpu.memory_space<vmem>>, vector<8x128xf32>
    %143 = arith.mulf %138, %142 : vector<8x128xf32>
    %144 = arith.addf %134, %143 : vector<8x128xf32>
    %c9_100 = arith.constant 9 : index
    %c0_101 = arith.constant 0 : index
    %c0_102 = arith.constant 0 : index
    %145 = vector.load %arg3[%c9_100, %c0_101, %c0_102] : memref<49x8x128xf32, #tpu.memory_space<vmem>>, vector<1x8x128xf32>
    %146 = vector.shape_cast %145 : vector<1x8x128xf32> to vector<8x128xf32>
    %c6_103 = arith.constant 6 : index
    %c0_104 = arith.constant 0 : index
    %147 = vector.load %arg8[%c6_103, %c0_104] : memref<32x128xf32, #tpu.memory_space<vmem>>, vector<8x128xf32>
    %148 = arith.mulf %146, %147 : vector<8x128xf32>
    %149 = arith.addf %141, %148 : vector<8x128xf32>
    %c14_105 = arith.constant 14 : index
    %c0_106 = arith.constant 0 : index
    %150 = vector.load %arg8[%c14_105, %c0_106] : memref<32x128xf32, #tpu.memory_space<vmem>>, vector<8x128xf32>
    %151 = arith.mulf %146, %150 : vector<8x128xf32>
    %152 = arith.addf %144, %151 : vector<8x128xf32>
    %c16_107 = arith.constant 16 : index
    %c0_108 = arith.constant 0 : index
    %c0_109 = arith.constant 0 : index
    %153 = vector.load %arg3[%c16_107, %c0_108, %c0_109] : memref<49x8x128xf32, #tpu.memory_space<vmem>>, vector<1x8x128xf32>
    %154 = vector.shape_cast %153 : vector<1x8x128xf32> to vector<8x128xf32>
    %c7_110 = arith.constant 7 : index
    %c0_111 = arith.constant 0 : index
    %155 = vector.load %arg8[%c7_110, %c0_111] : memref<32x128xf32, #tpu.memory_space<vmem>>, vector<8x128xf32>
    %156 = arith.mulf %154, %155 : vector<8x128xf32>
    %157 = arith.addf %149, %156 : vector<8x128xf32>
    %c15_112 = arith.constant 15 : index
    %c0_113 = arith.constant 0 : index
    %158 = vector.load %arg8[%c15_112, %c0_113] : memref<32x128xf32, #tpu.memory_space<vmem>>, vector<8x128xf32>
    %159 = arith.mulf %154, %158 : vector<8x128xf32>
    %160 = arith.addf %152, %159 : vector<8x128xf32>
    %c23 = arith.constant 23 : index
    %c0_114 = arith.constant 0 : index
    %c0_115 = arith.constant 0 : index
    %161 = vector.load %arg3[%c23, %c0_114, %c0_115] : memref<49x8x128xf32, #tpu.memory_space<vmem>>, vector<1x8x128xf32>
    %162 = vector.shape_cast %161 : vector<1x8x128xf32> to vector<8x128xf32>
    %c8_116 = arith.constant 8 : index
    %c0_117 = arith.constant 0 : index
    %163 = vector.load %arg8[%c8_116, %c0_117] : memref<32x128xf32, #tpu.memory_space<vmem>>, vector<8x128xf32>
    %164 = arith.mulf %162, %163 : vector<8x128xf32>
    %165 = arith.addf %157, %164 : vector<8x128xf32>
    %c16_118 = arith.constant 16 : index
    %c0_119 = arith.constant 0 : index
    %166 = vector.load %arg8[%c16_118, %c0_119] : memref<32x128xf32, #tpu.memory_space<vmem>>, vector<8x128xf32>
    %167 = arith.mulf %162, %166 : vector<8x128xf32>
    %168 = arith.addf %160, %167 : vector<8x128xf32>
    %c30 = arith.constant 30 : index
    %c0_120 = arith.constant 0 : index
    %c0_121 = arith.constant 0 : index
    %169 = vector.load %arg3[%c30, %c0_120, %c0_121] : memref<49x8x128xf32, #tpu.memory_space<vmem>>, vector<1x8x128xf32>
    %170 = vector.shape_cast %169 : vector<1x8x128xf32> to vector<8x128xf32>
    %c9_122 = arith.constant 9 : index
    %c0_123 = arith.constant 0 : index
    %171 = vector.load %arg8[%c9_122, %c0_123] : memref<32x128xf32, #tpu.memory_space<vmem>>, vector<8x128xf32>
    %172 = arith.mulf %170, %171 : vector<8x128xf32>
    %173 = arith.addf %165, %172 : vector<8x128xf32>
    %c17_124 = arith.constant 17 : index
    %c0_125 = arith.constant 0 : index
    %174 = vector.load %arg8[%c17_124, %c0_125] : memref<32x128xf32, #tpu.memory_space<vmem>>, vector<8x128xf32>
    %175 = arith.mulf %170, %174 : vector<8x128xf32>
    %176 = arith.addf %168, %175 : vector<8x128xf32>
    %c37 = arith.constant 37 : index
    %c0_126 = arith.constant 0 : index
    %c0_127 = arith.constant 0 : index
    %177 = vector.load %arg3[%c37, %c0_126, %c0_127] : memref<49x8x128xf32, #tpu.memory_space<vmem>>, vector<1x8x128xf32>
    %178 = vector.shape_cast %177 : vector<1x8x128xf32> to vector<8x128xf32>
    %c10_128 = arith.constant 10 : index
    %c0_129 = arith.constant 0 : index
    %179 = vector.load %arg8[%c10_128, %c0_129] : memref<32x128xf32, #tpu.memory_space<vmem>>, vector<8x128xf32>
    %180 = arith.mulf %178, %179 : vector<8x128xf32>
    %181 = arith.addf %173, %180 : vector<8x128xf32>
    %c18_130 = arith.constant 18 : index
    %c0_131 = arith.constant 0 : index
    %182 = vector.load %arg8[%c18_130, %c0_131] : memref<32x128xf32, #tpu.memory_space<vmem>>, vector<8x128xf32>
    %183 = arith.mulf %178, %182 : vector<8x128xf32>
    %184 = arith.addf %176, %183 : vector<8x128xf32>
    %c44 = arith.constant 44 : index
    %c0_132 = arith.constant 0 : index
    %c0_133 = arith.constant 0 : index
    %185 = vector.load %arg3[%c44, %c0_132, %c0_133] : memref<49x8x128xf32, #tpu.memory_space<vmem>>, vector<1x8x128xf32>
    %186 = vector.shape_cast %185 : vector<1x8x128xf32> to vector<8x128xf32>
    %c11_134 = arith.constant 11 : index
    %c0_135 = arith.constant 0 : index
    %187 = vector.load %arg8[%c11_134, %c0_135] : memref<32x128xf32, #tpu.memory_space<vmem>>, vector<8x128xf32>
    %188 = arith.mulf %186, %187 : vector<8x128xf32>
    %189 = arith.addf %181, %188 : vector<8x128xf32>
    %c19_136 = arith.constant 19 : index
    %c0_137 = arith.constant 0 : index
    %190 = vector.load %arg8[%c19_136, %c0_137] : memref<32x128xf32, #tpu.memory_space<vmem>>, vector<8x128xf32>
    %191 = arith.mulf %186, %190 : vector<8x128xf32>
    %192 = arith.addf %184, %191 : vector<8x128xf32>
    %c8_138 = arith.constant 8 : index
    %c0_139 = arith.constant 0 : index
    %193 = vector.load %arg8[%c8_138, %c0_139] : memref<32x128xf32, #tpu.memory_space<vmem>>, vector<16x128xf32>
    tpu.vector_store %arg8[%c8_138, %c0_139], %13 {strides = array<i32>} : memref<32x128xf32, #tpu.memory_space<vmem>>, vector<16x128xf32>,
    %c3 = arith.constant 3 : index
    %c0_140 = arith.constant 0 : index
    %c0_141 = arith.constant 0 : index
    %194 = vector.load %arg3[%c3, %c0_140, %c0_141] : memref<49x8x128xf32, #tpu.memory_space<vmem>>, vector<1x8x128xf32>
    %195 = vector.shape_cast %194 : vector<1x8x128xf32> to vector<8x128xf32>
    %c5_142 = arith.constant 5 : index
    %c0_143 = arith.constant 0 : index
    %196 = vector.load %arg8[%c5_142, %c0_143] : memref<32x128xf32, #tpu.memory_space<vmem>>, vector<8x128xf32>
    %197 = arith.mulf %195, %196 : vector<8x128xf32>
    %198 = arith.addf %189, %197 : vector<8x128xf32>
    %c13_144 = arith.constant 13 : index
    %c0_145 = arith.constant 0 : index
    %199 = vector.load %arg8[%c13_144, %c0_145] : memref<32x128xf32, #tpu.memory_space<vmem>>, vector<8x128xf32>
    %200 = arith.mulf %195, %199 : vector<8x128xf32>
    %201 = arith.addf %192, %200 : vector<8x128xf32>
    %c10_146 = arith.constant 10 : index
    %c0_147 = arith.constant 0 : index
    %c0_148 = arith.constant 0 : index
    %202 = vector.load %arg3[%c10_146, %c0_147, %c0_148] : memref<49x8x128xf32, #tpu.memory_space<vmem>>, vector<1x8x128xf32>
    %203 = vector.shape_cast %202 : vector<1x8x128xf32> to vector<8x128xf32>
    %c6_149 = arith.constant 6 : index
    %c0_150 = arith.constant 0 : index
    %204 = vector.load %arg8[%c6_149, %c0_150] : memref<32x128xf32, #tpu.memory_space<vmem>>, vector<8x128xf32>
    %205 = arith.mulf %203, %204 : vector<8x128xf32>
    %206 = arith.addf %198, %205 : vector<8x128xf32>
    %c14_151 = arith.constant 14 : index
    %c0_152 = arith.constant 0 : index
    %207 = vector.load %arg8[%c14_151, %c0_152] : memref<32x128xf32, #tpu.memory_space<vmem>>, vector<8x128xf32>
    %208 = arith.mulf %203, %207 : vector<8x128xf32>
    %209 = arith.addf %201, %208 : vector<8x128xf32>
    %c17_153 = arith.constant 17 : index
    %c0_154 = arith.constant 0 : index
    %c0_155 = arith.constant 0 : index
    %210 = vector.load %arg3[%c17_153, %c0_154, %c0_155] : memref<49x8x128xf32, #tpu.memory_space<vmem>>, vector<1x8x128xf32>
    %211 = vector.shape_cast %210 : vector<1x8x128xf32> to vector<8x128xf32>
    %c7_156 = arith.constant 7 : index
    %c0_157 = arith.constant 0 : index
    %212 = vector.load %arg8[%c7_156, %c0_157] : memref<32x128xf32, #tpu.memory_space<vmem>>, vector<8x128xf32>
    %213 = arith.mulf %211, %212 : vector<8x128xf32>
    %214 = arith.addf %206, %213 : vector<8x128xf32>
    %c15_158 = arith.constant 15 : index
    %c0_159 = arith.constant 0 : index
    %215 = vector.load %arg8[%c15_158, %c0_159] : memref<32x128xf32, #tpu.memory_space<vmem>>, vector<8x128xf32>
    %216 = arith.mulf %211, %215 : vector<8x128xf32>
    %217 = arith.addf %209, %216 : vector<8x128xf32>
    %c24_160 = arith.constant 24 : index
    %c0_161 = arith.constant 0 : index
    %c0_162 = arith.constant 0 : index
    %218 = vector.load %arg3[%c24_160, %c0_161, %c0_162] : memref<49x8x128xf32, #tpu.memory_space<vmem>>, vector<1x8x128xf32>
    %219 = vector.shape_cast %218 : vector<1x8x128xf32> to vector<8x128xf32>
    %c8_163 = arith.constant 8 : index
    %c0_164 = arith.constant 0 : index
    %220 = vector.load %arg8[%c8_163, %c0_164] : memref<32x128xf32, #tpu.memory_space<vmem>>, vector<8x128xf32>
    %221 = arith.mulf %219, %220 : vector<8x128xf32>
    %222 = arith.addf %214, %221 : vector<8x128xf32>
    %c16_165 = arith.constant 16 : index
    %c0_166 = arith.constant 0 : index
    %223 = vector.load %arg8[%c16_165, %c0_166] : memref<32x128xf32, #tpu.memory_space<vmem>>, vector<8x128xf32>
    %224 = arith.mulf %219, %223 : vector<8x128xf32>
    %225 = arith.addf %217, %224 : vector<8x128xf32>
    %c31 = arith.constant 31 : index
    %c0_167 = arith.constant 0 : index
    %c0_168 = arith.constant 0 : index
    %226 = vector.load %arg3[%c31, %c0_167, %c0_168] : memref<49x8x128xf32, #tpu.memory_space<vmem>>, vector<1x8x128xf32>
    %227 = vector.shape_cast %226 : vector<1x8x128xf32> to vector<8x128xf32>
    %c9_169 = arith.constant 9 : index
    %c0_170 = arith.constant 0 : index
    %228 = vector.load %arg8[%c9_169, %c0_170] : memref<32x128xf32, #tpu.memory_space<vmem>>, vector<8x128xf32>
    %229 = arith.mulf %227, %228 : vector<8x128xf32>
    %230 = arith.addf %222, %229 : vector<8x128xf32>
    %c17_171 = arith.constant 17 : index
    %c0_172 = arith.constant 0 : index
    %231 = vector.load %arg8[%c17_171, %c0_172] : memref<32x128xf32, #tpu.memory_space<vmem>>, vector<8x128xf32>
    %232 = arith.mulf %227, %231 : vector<8x128xf32>
    %233 = arith.addf %225, %232 : vector<8x128xf32>
    %c38 = arith.constant 38 : index
    %c0_173 = arith.constant 0 : index
    %c0_174 = arith.constant 0 : index
    %234 = vector.load %arg3[%c38, %c0_173, %c0_174] : memref<49x8x128xf32, #tpu.memory_space<vmem>>, vector<1x8x128xf32>
    %235 = vector.shape_cast %234 : vector<1x8x128xf32> to vector<8x128xf32>
    %c10_175 = arith.constant 10 : index
    %c0_176 = arith.constant 0 : index
    %236 = vector.load %arg8[%c10_175, %c0_176] : memref<32x128xf32, #tpu.memory_space<vmem>>, vector<8x128xf32>
    %237 = arith.mulf %235, %236 : vector<8x128xf32>
    %238 = arith.addf %230, %237 : vector<8x128xf32>
    %c18_177 = arith.constant 18 : index
    %c0_178 = arith.constant 0 : index
    %239 = vector.load %arg8[%c18_177, %c0_178] : memref<32x128xf32, #tpu.memory_space<vmem>>, vector<8x128xf32>
    %240 = arith.mulf %235, %239 : vector<8x128xf32>
    %241 = arith.addf %233, %240 : vector<8x128xf32>
    %c45 = arith.constant 45 : index
    %c0_179 = arith.constant 0 : index
    %c0_180 = arith.constant 0 : index
    %242 = vector.load %arg3[%c45, %c0_179, %c0_180] : memref<49x8x128xf32, #tpu.memory_space<vmem>>, vector<1x8x128xf32>
    %243 = vector.shape_cast %242 : vector<1x8x128xf32> to vector<8x128xf32>
    %c11_181 = arith.constant 11 : index
    %c0_182 = arith.constant 0 : index
    %244 = vector.load %arg8[%c11_181, %c0_182] : memref<32x128xf32, #tpu.memory_space<vmem>>, vector<8x128xf32>
    %245 = arith.mulf %243, %244 : vector<8x128xf32>
    %246 = arith.addf %238, %245 : vector<8x128xf32>
    %c19_183 = arith.constant 19 : index
    %c0_184 = arith.constant 0 : index
    %247 = vector.load %arg8[%c19_183, %c0_184] : memref<32x128xf32, #tpu.memory_space<vmem>>, vector<8x128xf32>
    %248 = arith.mulf %243, %247 : vector<8x128xf32>
    %249 = arith.addf %241, %248 : vector<8x128xf32>
    %c120_i32 = arith.constant 120 : i32
    %250 = tpu.dynamic_rotate %13 by %c120_i32 dim 1 : vector<16x128xf32>, i32 -> vector<16x128xf32>
    %c8_185 = arith.constant 8 : index
    %c0_186 = arith.constant 0 : index
    %251 = vector.load %arg8[%c8_185, %c0_186] : memref<32x128xf32, #tpu.memory_space<vmem>>, vector<16x128xf32>
    tpu.vector_store %arg8[%c8_185, %c0_186], %250 {strides = array<i32>} : memref<32x128xf32, #tpu.memory_space<vmem>>, vector<16x128xf32>,
    %c4 = arith.constant 4 : index
    %c0_187 = arith.constant 0 : index
    %c0_188 = arith.constant 0 : index
    %252 = vector.load %arg3[%c4, %c0_187, %c0_188] : memref<49x8x128xf32, #tpu.memory_space<vmem>>, vector<1x8x128xf32>
    %253 = vector.shape_cast %252 : vector<1x8x128xf32> to vector<8x128xf32>
    %c5_189 = arith.constant 5 : index
    %c0_190 = arith.constant 0 : index
    %254 = vector.load %arg8[%c5_189, %c0_190] : memref<32x128xf32, #tpu.memory_space<vmem>>, vector<8x128xf32>
    %255 = arith.mulf %253, %254 : vector<8x128xf32>
    %256 = arith.addf %246, %255 : vector<8x128xf32>
    %c13_191 = arith.constant 13 : index
    %c0_192 = arith.constant 0 : index
    %257 = vector.load %arg8[%c13_191, %c0_192] : memref<32x128xf32, #tpu.memory_space<vmem>>, vector<8x128xf32>
    %258 = arith.mulf %253, %257 : vector<8x128xf32>
    %259 = arith.addf %249, %258 : vector<8x128xf32>
    %c11_193 = arith.constant 11 : index
    %c0_194 = arith.constant 0 : index
    %c0_195 = arith.constant 0 : index
    %260 = vector.load %arg3[%c11_193, %c0_194, %c0_195] : memref<49x8x128xf32, #tpu.memory_space<vmem>>, vector<1x8x128xf32>
    %261 = vector.shape_cast %260 : vector<1x8x128xf32> to vector<8x128xf32>
    %c6_196 = arith.constant 6 : index
    %c0_197 = arith.constant 0 : index
    %262 = vector.load %arg8[%c6_196, %c0_197] : memref<32x128xf32, #tpu.memory_space<vmem>>, vector<8x128xf32>
    %263 = arith.mulf %261, %262 : vector<8x128xf32>
    %264 = arith.addf %256, %263 : vector<8x128xf32>
    %c14_198 = arith.constant 14 : index
    %c0_199 = arith.constant 0 : index
    %265 = vector.load %arg8[%c14_198, %c0_199] : memref<32x128xf32, #tpu.memory_space<vmem>>, vector<8x128xf32>
    %266 = arith.mulf %261, %265 : vector<8x128xf32>
    %267 = arith.addf %259, %266 : vector<8x128xf32>
    %c18_200 = arith.constant 18 : index
    %c0_201 = arith.constant 0 : index
    %c0_202 = arith.constant 0 : index
    %268 = vector.load %arg3[%c18_200, %c0_201, %c0_202] : memref<49x8x128xf32, #tpu.memory_space<vmem>>, vector<1x8x128xf32>
    %269 = vector.shape_cast %268 : vector<1x8x128xf32> to vector<8x128xf32>
    %c7_203 = arith.constant 7 : index
    %c0_204 = arith.constant 0 : index
    %270 = vector.load %arg8[%c7_203, %c0_204] : memref<32x128xf32, #tpu.memory_space<vmem>>, vector<8x128xf32>
    %271 = arith.mulf %269, %270 : vector<8x128xf32>
    %272 = arith.addf %264, %271 : vector<8x128xf32>
    %c15_205 = arith.constant 15 : index
    %c0_206 = arith.constant 0 : index
    %273 = vector.load %arg8[%c15_205, %c0_206] : memref<32x128xf32, #tpu.memory_space<vmem>>, vector<8x128xf32>
    %274 = arith.mulf %269, %273 : vector<8x128xf32>
    %275 = arith.addf %267, %274 : vector<8x128xf32>
    %c25 = arith.constant 25 : index
    %c0_207 = arith.constant 0 : index
    %c0_208 = arith.constant 0 : index
    %276 = vector.load %arg3[%c25, %c0_207, %c0_208] : memref<49x8x128xf32, #tpu.memory_space<vmem>>, vector<1x8x128xf32>
    %277 = vector.shape_cast %276 : vector<1x8x128xf32> to vector<8x128xf32>
    %c8_209 = arith.constant 8 : index
    %c0_210 = arith.constant 0 : index
    %278 = vector.load %arg8[%c8_209, %c0_210] : memref<32x128xf32, #tpu.memory_space<vmem>>, vector<8x128xf32>
    %279 = arith.mulf %277, %278 : vector<8x128xf32>
    %280 = arith.addf %272, %279 : vector<8x128xf32>
    %c16_211 = arith.constant 16 : index
    %c0_212 = arith.constant 0 : index
    %281 = vector.load %arg8[%c16_211, %c0_212] : memref<32x128xf32, #tpu.memory_space<vmem>>, vector<8x128xf32>
    %282 = arith.mulf %277, %281 : vector<8x128xf32>
    %283 = arith.addf %275, %282 : vector<8x128xf32>
    %c32 = arith.constant 32 : index
    %c0_213 = arith.constant 0 : index
    %c0_214 = arith.constant 0 : index
    %284 = vector.load %arg3[%c32, %c0_213, %c0_214] : memref<49x8x128xf32, #tpu.memory_space<vmem>>, vector<1x8x128xf32>
    %285 = vector.shape_cast %284 : vector<1x8x128xf32> to vector<8x128xf32>
    %c9_215 = arith.constant 9 : index
    %c0_216 = arith.constant 0 : index
    %286 = vector.load %arg8[%c9_215, %c0_216] : memref<32x128xf32, #tpu.memory_space<vmem>>, vector<8x128xf32>
    %287 = arith.mulf %285, %286 : vector<8x128xf32>
    %288 = arith.addf %280, %287 : vector<8x128xf32>
    %c17_217 = arith.constant 17 : index
    %c0_218 = arith.constant 0 : index
    %289 = vector.load %arg8[%c17_217, %c0_218] : memref<32x128xf32, #tpu.memory_space<vmem>>, vector<8x128xf32>
    %290 = arith.mulf %285, %289 : vector<8x128xf32>
    %291 = arith.addf %283, %290 : vector<8x128xf32>
    %c39 = arith.constant 39 : index
    %c0_219 = arith.constant 0 : index
    %c0_220 = arith.constant 0 : index
    %292 = vector.load %arg3[%c39, %c0_219, %c0_220] : memref<49x8x128xf32, #tpu.memory_space<vmem>>, vector<1x8x128xf32>
    %293 = vector.shape_cast %292 : vector<1x8x128xf32> to vector<8x128xf32>
    %c10_221 = arith.constant 10 : index
    %c0_222 = arith.constant 0 : index
    %294 = vector.load %arg8[%c10_221, %c0_222] : memref<32x128xf32, #tpu.memory_space<vmem>>, vector<8x128xf32>
    %295 = arith.mulf %293, %294 : vector<8x128xf32>
    %296 = arith.addf %288, %295 : vector<8x128xf32>
    %c18_223 = arith.constant 18 : index
    %c0_224 = arith.constant 0 : index
    %297 = vector.load %arg8[%c18_223, %c0_224] : memref<32x128xf32, #tpu.memory_space<vmem>>, vector<8x128xf32>
    %298 = arith.mulf %293, %297 : vector<8x128xf32>
    %299 = arith.addf %291, %298 : vector<8x128xf32>
    %c46 = arith.constant 46 : index
    %c0_225 = arith.constant 0 : index
    %c0_226 = arith.constant 0 : index
    %300 = vector.load %arg3[%c46, %c0_225, %c0_226] : memref<49x8x128xf32, #tpu.memory_space<vmem>>, vector<1x8x128xf32>
    %301 = vector.shape_cast %300 : vector<1x8x128xf32> to vector<8x128xf32>
    %c11_227 = arith.constant 11 : index
    %c0_228 = arith.constant 0 : index
    %302 = vector.load %arg8[%c11_227, %c0_228] : memref<32x128xf32, #tpu.memory_space<vmem>>, vector<8x128xf32>
    %303 = arith.mulf %301, %302 : vector<8x128xf32>
    %304 = arith.addf %296, %303 : vector<8x128xf32>
    %c19_229 = arith.constant 19 : index
    %c0_230 = arith.constant 0 : index
    %305 = vector.load %arg8[%c19_229, %c0_230] : memref<32x128xf32, #tpu.memory_space<vmem>>, vector<8x128xf32>
    %306 = arith.mulf %301, %305 : vector<8x128xf32>
    %307 = arith.addf %299, %306 : vector<8x128xf32>
    %c112_i32 = arith.constant 112 : i32
    %308 = tpu.dynamic_rotate %13 by %c112_i32 dim 1 : vector<16x128xf32>, i32 -> vector<16x128xf32>
    %c8_231 = arith.constant 8 : index
    %c0_232 = arith.constant 0 : index
    %309 = vector.load %arg8[%c8_231, %c0_232] : memref<32x128xf32, #tpu.memory_space<vmem>>, vector<16x128xf32>
    tpu.vector_store %arg8[%c8_231, %c0_232], %308 {strides = array<i32>} : memref<32x128xf32, #tpu.memory_space<vmem>>, vector<16x128xf32>,
    %c5_233 = arith.constant 5 : index
    %c0_234 = arith.constant 0 : index
    %c0_235 = arith.constant 0 : index
    %310 = vector.load %arg3[%c5_233, %c0_234, %c0_235] : memref<49x8x128xf32, #tpu.memory_space<vmem>>, vector<1x8x128xf32>
    %311 = vector.shape_cast %310 : vector<1x8x128xf32> to vector<8x128xf32>
    %c5_236 = arith.constant 5 : index
    %c0_237 = arith.constant 0 : index
    %312 = vector.load %arg8[%c5_236, %c0_237] : memref<32x128xf32, #tpu.memory_space<vmem>>, vector<8x128xf32>
    %313 = arith.mulf %311, %312 : vector<8x128xf32>
    %314 = arith.addf %304, %313 : vector<8x128xf32>
    %c13_238 = arith.constant 13 : index
    %c0_239 = arith.constant 0 : index
    %315 = vector.load %arg8[%c13_238, %c0_239] : memref<32x128xf32, #tpu.memory_space<vmem>>, vector<8x128xf32>
    %316 = arith.mulf %311, %315 : vector<8x128xf32>
    %317 = arith.addf %307, %316 : vector<8x128xf32>
    %c12 = arith.constant 12 : index
    %c0_240 = arith.constant 0 : index
    %c0_241 = arith.constant 0 : index
    %318 = vector.load %arg3[%c12, %c0_240, %c0_241] : memref<49x8x128xf32, #tpu.memory_space<vmem>>, vector<1x8x128xf32>
    %319 = vector.shape_cast %318 : vector<1x8x128xf32> to vector<8x128xf32>
    %c6_242 = arith.constant 6 : index
    %c0_243 = arith.constant 0 : index
    %320 = vector.load %arg8[%c6_242, %c0_243] : memref<32x128xf32, #tpu.memory_space<vmem>>, vector<8x128xf32>
    %321 = arith.mulf %319, %320 : vector<8x128xf32>
    %322 = arith.addf %314, %321 : vector<8x128xf32>
    %c14_244 = arith.constant 14 : index
    %c0_245 = arith.constant 0 : index
    %323 = vector.load %arg8[%c14_244, %c0_245] : memref<32x128xf32, #tpu.memory_space<vmem>>, vector<8x128xf32>
    %324 = arith.mulf %319, %323 : vector<8x128xf32>
    %325 = arith.addf %317, %324 : vector<8x128xf32>
    %c19_246 = arith.constant 19 : index
    %c0_247 = arith.constant 0 : index
    %c0_248 = arith.constant 0 : index
    %326 = vector.load %arg3[%c19_246, %c0_247, %c0_248] : memref<49x8x128xf32, #tpu.memory_space<vmem>>, vector<1x8x128xf32>
    %327 = vector.shape_cast %326 : vector<1x8x128xf32> to vector<8x128xf32>
    %c7_249 = arith.constant 7 : index
    %c0_250 = arith.constant 0 : index
    %328 = vector.load %arg8[%c7_249, %c0_250] : memref<32x128xf32, #tpu.memory_space<vmem>>, vector<8x128xf32>
    %329 = arith.mulf %327, %328 : vector<8x128xf32>
    %330 = arith.addf %322, %329 : vector<8x128xf32>
    %c15_251 = arith.constant 15 : index
    %c0_252 = arith.constant 0 : index
    %331 = vector.load %arg8[%c15_251, %c0_252] : memref<32x128xf32, #tpu.memory_space<vmem>>, vector<8x128xf32>
    %332 = arith.mulf %327, %331 : vector<8x128xf32>
    %333 = arith.addf %325, %332 : vector<8x128xf32>
    %c26 = arith.constant 26 : index
    %c0_253 = arith.constant 0 : index
    %c0_254 = arith.constant 0 : index
    %334 = vector.load %arg3[%c26, %c0_253, %c0_254] : memref<49x8x128xf32, #tpu.memory_space<vmem>>, vector<1x8x128xf32>
    %335 = vector.shape_cast %334 : vector<1x8x128xf32> to vector<8x128xf32>
    %c8_255 = arith.constant 8 : index
    %c0_256 = arith.constant 0 : index
    %336 = vector.load %arg8[%c8_255, %c0_256] : memref<32x128xf32, #tpu.memory_space<vmem>>, vector<8x128xf32>
    %337 = arith.mulf %335, %336 : vector<8x128xf32>
    %338 = arith.addf %330, %337 : vector<8x128xf32>
    %c16_257 = arith.constant 16 : index
    %c0_258 = arith.constant 0 : index
    %339 = vector.load %arg8[%c16_257, %c0_258] : memref<32x128xf32, #tpu.memory_space<vmem>>, vector<8x128xf32>
    %340 = arith.mulf %335, %339 : vector<8x128xf32>
    %341 = arith.addf %333, %340 : vector<8x128xf32>
    %c33 = arith.constant 33 : index
    %c0_259 = arith.constant 0 : index
    %c0_260 = arith.constant 0 : index
    %342 = vector.load %arg3[%c33, %c0_259, %c0_260] : memref<49x8x128xf32, #tpu.memory_space<vmem>>, vector<1x8x128xf32>
    %343 = vector.shape_cast %342 : vector<1x8x128xf32> to vector<8x128xf32>
    %c9_261 = arith.constant 9 : index
    %c0_262 = arith.constant 0 : index
    %344 = vector.load %arg8[%c9_261, %c0_262] : memref<32x128xf32, #tpu.memory_space<vmem>>, vector<8x128xf32>
    %345 = arith.mulf %343, %344 : vector<8x128xf32>
    %346 = arith.addf %338, %345 : vector<8x128xf32>
    %c17_263 = arith.constant 17 : index
    %c0_264 = arith.constant 0 : index
    %347 = vector.load %arg8[%c17_263, %c0_264] : memref<32x128xf32, #tpu.memory_space<vmem>>, vector<8x128xf32>
    %348 = arith.mulf %343, %347 : vector<8x128xf32>
    %349 = arith.addf %341, %348 : vector<8x128xf32>
    %c40 = arith.constant 40 : index
    %c0_265 = arith.constant 0 : index
    %c0_266 = arith.constant 0 : index
    %350 = vector.load %arg3[%c40, %c0_265, %c0_266] : memref<49x8x128xf32, #tpu.memory_space<vmem>>, vector<1x8x128xf32>
    %351 = vector.shape_cast %350 : vector<1x8x128xf32> to vector<8x128xf32>
    %c10_267 = arith.constant 10 : index
    %c0_268 = arith.constant 0 : index
    %352 = vector.load %arg8[%c10_267, %c0_268] : memref<32x128xf32, #tpu.memory_space<vmem>>, vector<8x128xf32>
    %353 = arith.mulf %351, %352 : vector<8x128xf32>
    %354 = arith.addf %346, %353 : vector<8x128xf32>
    %c18_269 = arith.constant 18 : index
    %c0_270 = arith.constant 0 : index
    %355 = vector.load %arg8[%c18_269, %c0_270] : memref<32x128xf32, #tpu.memory_space<vmem>>, vector<8x128xf32>
    %356 = arith.mulf %351, %355 : vector<8x128xf32>
    %357 = arith.addf %349, %356 : vector<8x128xf32>
    %c47 = arith.constant 47 : index
    %c0_271 = arith.constant 0 : index
    %c0_272 = arith.constant 0 : index
    %358 = vector.load %arg3[%c47, %c0_271, %c0_272] : memref<49x8x128xf32, #tpu.memory_space<vmem>>, vector<1x8x128xf32>
    %359 = vector.shape_cast %358 : vector<1x8x128xf32> to vector<8x128xf32>
    %c11_273 = arith.constant 11 : index
    %c0_274 = arith.constant 0 : index
    %360 = vector.load %arg8[%c11_273, %c0_274] : memref<32x128xf32, #tpu.memory_space<vmem>>, vector<8x128xf32>
    %361 = arith.mulf %359, %360 : vector<8x128xf32>
    %362 = arith.addf %354, %361 : vector<8x128xf32>
    %c19_275 = arith.constant 19 : index
    %c0_276 = arith.constant 0 : index
    %363 = vector.load %arg8[%c19_275, %c0_276] : memref<32x128xf32, #tpu.memory_space<vmem>>, vector<8x128xf32>
    %364 = arith.mulf %359, %363 : vector<8x128xf32>
    %365 = arith.addf %357, %364 : vector<8x128xf32>
    %c104_i32 = arith.constant 104 : i32
    %366 = tpu.dynamic_rotate %13 by %c104_i32 dim 1 : vector<16x128xf32>, i32 -> vector<16x128xf32>
    %c8_277 = arith.constant 8 : index
    %c0_278 = arith.constant 0 : index
    %367 = vector.load %arg8[%c8_277, %c0_278] : memref<32x128xf32, #tpu.memory_space<vmem>>, vector<16x128xf32>
    tpu.vector_store %arg8[%c8_277, %c0_278], %366 {strides = array<i32>} : memref<32x128xf32, #tpu.memory_space<vmem>>, vector<16x128xf32>,
    %c6_279 = arith.constant 6 : index
    %c0_280 = arith.constant 0 : index
    %c0_281 = arith.constant 0 : index
    %368 = vector.load %arg3[%c6_279, %c0_280, %c0_281] : memref<49x8x128xf32, #tpu.memory_space<vmem>>, vector<1x8x128xf32>
    %369 = vector.shape_cast %368 : vector<1x8x128xf32> to vector<8x128xf32>
    %c5_282 = arith.constant 5 : index
    %c0_283 = arith.constant 0 : index
    %370 = vector.load %arg8[%c5_282, %c0_283] : memref<32x128xf32, #tpu.memory_space<vmem>>, vector<8x128xf32>
    %371 = arith.mulf %369, %370 : vector<8x128xf32>
    %372 = arith.addf %362, %371 : vector<8x128xf32>
    %c13_284 = arith.constant 13 : index
    %c0_285 = arith.constant 0 : index
    %373 = vector.load %arg8[%c13_284, %c0_285] : memref<32x128xf32, #tpu.memory_space<vmem>>, vector<8x128xf32>
    %374 = arith.mulf %369, %373 : vector<8x128xf32>
    %375 = arith.addf %365, %374 : vector<8x128xf32>
    %c13_286 = arith.constant 13 : index
    %c0_287 = arith.constant 0 : index
    %c0_288 = arith.constant 0 : index
    %376 = vector.load %arg3[%c13_286, %c0_287, %c0_288] : memref<49x8x128xf32, #tpu.memory_space<vmem>>, vector<1x8x128xf32>
    %377 = vector.shape_cast %376 : vector<1x8x128xf32> to vector<8x128xf32>
    %c6_289 = arith.constant 6 : index
    %c0_290 = arith.constant 0 : index
    %378 = vector.load %arg8[%c6_289, %c0_290] : memref<32x128xf32, #tpu.memory_space<vmem>>, vector<8x128xf32>
    %379 = arith.mulf %377, %378 : vector<8x128xf32>
    %380 = arith.addf %372, %379 : vector<8x128xf32>
    %c14_291 = arith.constant 14 : index
    %c0_292 = arith.constant 0 : index
    %381 = vector.load %arg8[%c14_291, %c0_292] : memref<32x128xf32, #tpu.memory_space<vmem>>, vector<8x128xf32>
    %382 = arith.mulf %377, %381 : vector<8x128xf32>
    %383 = arith.addf %375, %382 : vector<8x128xf32>
    %c20 = arith.constant 20 : index
    %c0_293 = arith.constant 0 : index
    %c0_294 = arith.constant 0 : index
    %384 = vector.load %arg3[%c20, %c0_293, %c0_294] : memref<49x8x128xf32, #tpu.memory_space<vmem>>, vector<1x8x128xf32>
    %385 = vector.shape_cast %384 : vector<1x8x128xf32> to vector<8x128xf32>
    %c7_295 = arith.constant 7 : index
    %c0_296 = arith.constant 0 : index
    %386 = vector.load %arg8[%c7_295, %c0_296] : memref<32x128xf32, #tpu.memory_space<vmem>>, vector<8x128xf32>
    %387 = arith.mulf %385, %386 : vector<8x128xf32>
    %388 = arith.addf %380, %387 : vector<8x128xf32>
    %c15_297 = arith.constant 15 : index
    %c0_298 = arith.constant 0 : index
    %389 = vector.load %arg8[%c15_297, %c0_298] : memref<32x128xf32, #tpu.memory_space<vmem>>, vector<8x128xf32>
    %390 = arith.mulf %385, %389 : vector<8x128xf32>
    %391 = arith.addf %383, %390 : vector<8x128xf32>
    %c27 = arith.constant 27 : index
    %c0_299 = arith.constant 0 : index
    %c0_300 = arith.constant 0 : index
    %392 = vector.load %arg3[%c27, %c0_299, %c0_300] : memref<49x8x128xf32, #tpu.memory_space<vmem>>, vector<1x8x128xf32>
    %393 = vector.shape_cast %392 : vector<1x8x128xf32> to vector<8x128xf32>
    %c8_301 = arith.constant 8 : index
    %c0_302 = arith.constant 0 : index
    %394 = vector.load %arg8[%c8_301, %c0_302] : memref<32x128xf32, #tpu.memory_space<vmem>>, vector<8x128xf32>
    %395 = arith.mulf %393, %394 : vector<8x128xf32>
    %396 = arith.addf %388, %395 : vector<8x128xf32>
    %c16_303 = arith.constant 16 : index
    %c0_304 = arith.constant 0 : index
    %397 = vector.load %arg8[%c16_303, %c0_304] : memref<32x128xf32, #tpu.memory_space<vmem>>, vector<8x128xf32>
    %398 = arith.mulf %393, %397 : vector<8x128xf32>
    %399 = arith.addf %391, %398 : vector<8x128xf32>
    %c34 = arith.constant 34 : index
    %c0_305 = arith.constant 0 : index
    %c0_306 = arith.constant 0 : index
    %400 = vector.load %arg3[%c34, %c0_305, %c0_306] : memref<49x8x128xf32, #tpu.memory_space<vmem>>, vector<1x8x128xf32>
    %401 = vector.shape_cast %400 : vector<1x8x128xf32> to vector<8x128xf32>
    %c9_307 = arith.constant 9 : index
    %c0_308 = arith.constant 0 : index
    %402 = vector.load %arg8[%c9_307, %c0_308] : memref<32x128xf32, #tpu.memory_space<vmem>>, vector<8x128xf32>
    %403 = arith.mulf %401, %402 : vector<8x128xf32>
    %404 = arith.addf %396, %403 : vector<8x128xf32>
    %c17_309 = arith.constant 17 : index
    %c0_310 = arith.constant 0 : index
    %405 = vector.load %arg8[%c17_309, %c0_310] : memref<32x128xf32, #tpu.memory_space<vmem>>, vector<8x128xf32>
    %406 = arith.mulf %401, %405 : vector<8x128xf32>
    %407 = arith.addf %399, %406 : vector<8x128xf32>
    %c41 = arith.constant 41 : index
    %c0_311 = arith.constant 0 : index
    %c0_312 = arith.constant 0 : index
    %408 = vector.load %arg3[%c41, %c0_311, %c0_312] : memref<49x8x128xf32, #tpu.memory_space<vmem>>, vector<1x8x128xf32>
    %409 = vector.shape_cast %408 : vector<1x8x128xf32> to vector<8x128xf32>
    %c10_313 = arith.constant 10 : index
    %c0_314 = arith.constant 0 : index
    %410 = vector.load %arg8[%c10_313, %c0_314] : memref<32x128xf32, #tpu.memory_space<vmem>>, vector<8x128xf32>
    %411 = arith.mulf %409, %410 : vector<8x128xf32>
    %412 = arith.addf %404, %411 : vector<8x128xf32>
    %c18_315 = arith.constant 18 : index
    %c0_316 = arith.constant 0 : index
    %413 = vector.load %arg8[%c18_315, %c0_316] : memref<32x128xf32, #tpu.memory_space<vmem>>, vector<8x128xf32>
    %414 = arith.mulf %409, %413 : vector<8x128xf32>
    %415 = arith.addf %407, %414 : vector<8x128xf32>
    %c48 = arith.constant 48 : index
    %c0_317 = arith.constant 0 : index
    %c0_318 = arith.constant 0 : index
    %416 = vector.load %arg3[%c48, %c0_317, %c0_318] : memref<49x8x128xf32, #tpu.memory_space<vmem>>, vector<1x8x128xf32>
    %417 = vector.shape_cast %416 : vector<1x8x128xf32> to vector<8x128xf32>
    %c11_319 = arith.constant 11 : index
    %c0_320 = arith.constant 0 : index
    %418 = vector.load %arg8[%c11_319, %c0_320] : memref<32x128xf32, #tpu.memory_space<vmem>>, vector<8x128xf32>
    %419 = arith.mulf %417, %418 : vector<8x128xf32>
    %420 = arith.addf %412, %419 : vector<8x128xf32>
    %c19_321 = arith.constant 19 : index
    %c0_322 = arith.constant 0 : index
    %421 = vector.load %arg8[%c19_321, %c0_322] : memref<32x128xf32, #tpu.memory_space<vmem>>, vector<8x128xf32>
    %422 = arith.mulf %417, %421 : vector<8x128xf32>
    %423 = arith.addf %415, %422 : vector<8x128xf32>
    %424 = tpu.concatenate %420, %423 in 0 : vector<8x128xf32>, vector<8x128xf32> -> vector<16x128xf32>
    %425 = arith.truncf %424 : vector<16x128xf32> to vector<16x128xbf16>
    %c0_323 = arith.constant 0 : index
    %c0_324 = arith.constant 0 : index
    %426 = vector.load %arg4[%c0_323, %c0_324] : memref<128x64xbf16, #tpu.memory_space<vmem>>, vector<128x64xbf16>
    %cst_325 = arith.constant dense<0.000000e+00> : vector<16x64xf32>
    %427 = tpu.matmul %425, %426, %cst_325 {dimension_numbers = #tpu.dot_dimension_numbers<[1], [0], [0], [1], [0, 0, 1, 1], [], []>} : vector<16x128xbf16>, vector<128x64xbf16>, vector<16x64xf32> -> vector<16x64xf32>
    %428 = vector.extract_strided_slice %427 {offsets = [0, 0], sizes = [8, 64], strides = [1, 1]} : vector<16x64xf32> to vector<8x64xf32>
    %429 = vector.extract_strided_slice %427 {offsets = [8, 0], sizes = [8, 64], strides = [1, 1]} : vector<16x64xf32> to vector<8x64xf32>
    %430 = tpu.concatenate %428, %429 in 1 : vector<8x64xf32>, vector<8x64xf32> -> vector<8x128xf32>
    %c0_326 = arith.constant 0 : index
    %c0_327 = arith.constant 0 : index
    %c0_328 = arith.constant 0 : index
    %431 = vector.load %arg7[%c0_326, %c0_327, %c0_328] : memref<1x8x128xf32, #tpu.memory_space<vmem>>, vector<1x8x128xf32>
    %432 = vector.shape_cast %431 : vector<1x8x128xf32> to vector<8x128xf32>
    %433 = vector.shape_cast %430 : vector<8x128xf32> to vector<1x8x128xf32>
    tpu.vector_store %arg7[%c0_326, %c0_327, %c0_328], %433 {strides = array<i32>} : memref<1x8x128xf32, #tpu.memory_space<vmem>>, vector<1x8x128xf32>,
    return
  }
  func.func @transform_0(%arg0: i32) -> (i32, i32, i32) {
    %c0_i32 = arith.constant 0 : i32
    %c0_i32_0 = arith.constant 0 : i32
    %c0_i32_1 = arith.constant 0 : i32
    return %arg0, %c0_i32, %c0_i32_0 : i32, i32, i32
  }
  func.func @transform_1(%arg0: i32) -> (i32, i32) {
    %c0_i32 = arith.constant 0 : i32
    %c0_i32_0 = arith.constant 0 : i32
    %c0_i32_1 = arith.constant 0 : i32
    return %c0_i32, %c0_i32_0 : i32, i32
  }
  func.func @transform_2(%arg0: i32) -> (i32, i32, i32) {
    %c0_i32 = arith.constant 0 : i32
    %c0_i32_0 = arith.constant 0 : i32
    %c0_i32_1 = arith.constant 0 : i32
    %c0_i32_2 = arith.constant 0 : i32
    return %c0_i32, %c0_i32_0, %c0_i32_1 : i32, i32, i32
  }
  func.func @transform_3(%arg0: i32) -> (i32, i32) {
    %c0_i32 = arith.constant 0 : i32
    %c0_i32_0 = arith.constant 0 : i32
    %c0_i32_1 = arith.constant 0 : i32
    return %c0_i32, %c0_i32_0 : i32, i32
  }
  func.func @transform_4(%arg0: i32) -> i32 {
    %c0_i32 = arith.constant 0 : i32
    %c0_i32_0 = arith.constant 0 : i32
    return %c0_i32 : i32
  }
  func.func @transform_5(%arg0: i32) -> i32 {
    %c0_i32 = arith.constant 0 : i32
    %c0_i32_0 = arith.constant 0 : i32
    return %c0_i32 : i32
  }
  func.func @transform_6(%arg0: i32) -> (i32, i32, i32) {
    %c0_i32 = arith.constant 0 : i32
    %c0_i32_0 = arith.constant 0 : i32
    %c0_i32_1 = arith.constant 0 : i32
    return %arg0, %c0_i32, %c0_i32_0 : i32, i32, i32
  }
}

</mosaic_0001>

<bundles_post_ra>
// kernel: tpu_custom_call.1
= control target key start
LH: loop header
LB: loop body
LE: loop exit
PB: predicated region body
PF: predicated region fallthrough
CT: control target
= control target key end

     0   :  { %s1549_s0 = inlined_call_operand.vmem [shape: f32[2,16,64], index: 0, kind: input, shape index: {}]   ;;  %s1550_s1 = inlined_call_operand.vmem [shape: bf16[64,128], index: 1, kind: input, shape index: {}]   ;;  %s1551_s2 = inlined_call_operand.hbm [shape: f32[49,8,128], index: 2, kind: input, shape index: {}]   ;;  %s1552_s3 = inlined_call_operand.vmem [shape: bf16[128,64], index: 3, kind: input, shape index: {}]   ;;  %s1553_s4 = inlined_call_operand.<no memory space> [shape: f32[1], index: 4, kind: input, shape index: {}]   ;;  %s1554_s5 = inlined_call_operand.<no memory space> [shape: f32[1], index: 5, kind: input, shape index: {}]   ;;  %s1555_s6 = inlined_call_operand.hbm [shape: f32[2,8,128], index: 6, kind: output, shape index: {}]  }
   0x1   :  { %11 = sst [smem:[#allocation3]] %s1553_s4 }
   0x2   :  { %12 = sst [smem:[#allocation4]] %s1554_s5 }
   0x3   :  { %13 = vsyncpa [#allocation6], 0 }
   0x4   :  { %14 = vsyncpa [#allocation7], 0 }
   0x5   :  { %16 = vsyncpa [#allocation7 + $0x1], 0  ;;  %s1284_s25 = smov 0   ;;  %s1286_s26 = smov 0  }
   0x6   :  { %s1288_s27 = smov 0   ;;  %s1290_s28 = smov 0  }
   0x7 LB: > { %s1305_s4 = sadd.s32 4294967295, %s1228_s28   ;;  %s988_s5 = sadd.s32 4294967294, %s1228_s28   ;;  %s1228_s28 = sphi %s1290_s28, %s1571_s28   ;;  %s1224_s27 = sphi %s1288_s27, %s1570_s27   ;;  %s1220_s26 = sphi %s1286_s26, %s1569_s26   ;;  %s1216_s25 = sphi %s1284_s25, %s1568_s25  }
   0x8   : > { %s1309_s29 = sadd.s32 1, %s1228_s28   ;;  %s160_s30 = sadd.s32 1, %s1224_s27 }
   0x9   : > { %s157_s7 = ssub.s32 %s1228_s28, %s1309_s29  ;;  %p170_p0 = scmp.ne.s32.totalorder %s1224_s27, %s1220_s26 }
   0xa   : > { %p158_p1 = scmp.eq.s32.totalorder %s157_s7, 0  ;;  %p171_p2 = scmp.eq.s32.totalorder %s1305_s4, 1 }
   0xb   : > { %p176_p3 = scmp.ne.s32.totalorder %s1220_s26, %s1216_s25  ;;  %p177_p4 = scmp.eq.s32.totalorder %s988_s5, 1 }
   0xc   : > { %s1320_s8 = scalar_select %p158_p1, %s1224_s27, %s160_s30  }
   0xd   : > { %p1322_p5 = por %p171_p2, %p170_p0  ;;  %p1326_p6 = por %p177_p4, %p176_p3 }
   0xe   : > { %p989_p7 = scmp.ge.s32.totalorder %s1228_s28, 1  ;;  %p184_p8 = scmp.lt.s32.totalorder %s1228_s28, 3 }
   0xf   : > { %s1559_s9 = scalar_select %p1322_p5, 1, 0 }
  0x10   : > { %s1560_s10 = scalar_select %p1326_p6, 1, 0 }
  0x11   : > { %p1556_p9 = scmp.eq.s32.totalorder %s1305_s4, 0  ;;  %p1333_p10 = pnand %p989_p7, %p184_p8 }
  0x12   : > { %s1230_s12 = smov [#allocation5]   ;;  %s1134_s17 = scalar_lea.hbm %s1551_s2, 6272 }
  0x13   : > { %s1561_s11 = scalar_select %p1333_p10, 1, 0 }
  0x14   : > { %s199_s13 = sshll.u32 %s1230_s12, 4  ;;  %p1067_p11 = pneg %p1333_p10  ;;  %s200_s13 = int_to_ptr.vmem [resolvable:$true] %s199_s13 }
  0x15   : > { %p1135_p13 = scmp.ne.s32.totalorder %s1551_s2, %s1134_s17  ;;  %p1141_p3 = scmp.lt.u32.totalorder %s1134_s17, %s1551_s2 }
  0x16   : > { %p1341_p12 = pnand %p1556_p9, %p1067_p11 }
  0x18   : > { %p1136_p0 = pneg %p1341_p12 }
  0x1a   : > { %p1137_p1 = pnand %p1136_p0, %p1135_p13 }
  0x1c   : > { %p1138_p2 = pneg %p1137_p1 }
  0x1e   : > { %p1143_p4 = pnand %p1141_p3, %p1138_p2 }
  0x20   : > { %1146 = shalt.err (!%p1143_p4)
}
  0x21   : > { %s1147_s22 = scalar_lea.vmem %s200_s13, 6272  ;;  %p1155_p9 = scmp.lt.s32.totalorder %s200_s13, %s200_s13 }
  0x22   : > { %p1148_p7 = scmp.ne.s32.totalorder %s200_s13, %s1147_s22  ;;  %p1156_p6 = scmp.lt.s32.totalorder %s1147_s22, %s1147_s22 }
  0x24   : > { %p1150_p8 = pnand %p1148_p7, %p1136_p0  ;;  %p1157_p5 = por %p1156_p6, %p1155_p9 }
  0x26   : > { %p1151_p11 = pneg %p1150_p8 }
  0x28   : > { %p1158_p10 = pnand %p1157_p5, %p1151_p11 }
  0x2a   : > { %1161 = shalt.err (!%p1158_p10)
}
  0x2b   : > { %s1231_s23 = smov 128   ;;  %s1232_s24 = smov 8  }
  0x2c   : > { %1070 = dma.hbm_to_vmem [thread:$0]  (!%p1341_p12), %s1551_s2, 6272, %s200_s13, [#allocation6], %s1231_s23, %s1231_s23, %s1232_s24  }
  0x2d   : > { %p1563_p13 = scmp.ne.s32.totalorder %s1561_s11, 0 }
  0x2e   : > { %p1564_p1 = scmp.eq.s32.totalorder (!%p1563_p13), %s1305_s4, 0 }
  0x2f   : > { %232 = sbr.rel (%p1563_p13) target bundleno = 865 (0x361), region = 44 }
  0x36   : > { %1207 = dma.done.wait (%p1564_p1), [#allocation6], 6272   ;;  %p1565_p0 = pmov %p1564_p1 }
  0x37   : > { %v1233_v0 = vmov 0.0   ;;  %vm1234_vm0 = vmmov 0   ;;  %p262_p5 = scmp.lt.s32.totalorder %s1305_s4, 1  ;;  %v1122_v1 = vld [vmem:[%s1550_s1] sm:$0xff]   ;;  %v1123_v2 = vld [vmem:[%s1550_s1 + $0x8] sm:$0xff]   ;;  %v1124_v3 = vld [vmem:[%s1550_s1 + $0x10] sm:$0xff]  }
  0x38   : > { %1209 = vsyncadd (%p1565_p0), [#allocation6], 4294961024  ;;  %1029 = vmatprep.subr.bf16.mxu0 %v1233_v0  ;;  %360 = vst [vmem:[#allocation2] sm:$0xff] %v1233_v0  ;;  %1037 = vmatprep.mubr.msk.bf16.mxu0 %vm1234_vm0, %v1233_v0  ;;  %v1125_v4 = vld [vmem:[%s1550_s1 + $0x18] sm:$0xff]   ;;  %vm303_vm1 = vcmask 523264   ;;  %s348_s23 = sld [smem:[#allocation3]] }
  0x39   : > { %361 = vst [vmem:[#allocation2 + $0x18] sm:$0xff] %v1233_v0  ;;  %1041 = vmatprep.subr.bf16.mxu1 %v1233_v0  ;;  %1057 = vmatprep.mubr.msk.bf16.mxu1 %vm1234_vm0, %v1233_v0  ;;  %s263_s12 = scalar_select %p262_p5, %s1305_s4, 1  ;;  %v1126_v22 = vld [vmem:[%s1552_s3] sm:$0xff]   ;;  %v1127_v23 = vld [vmem:[%s1552_s3 + $0x8] sm:$0xff]   ;;  %v1128_v24 = vld [vmem:[%s1552_s3 + $0x10] sm:$0xff]  }
  0x3a   : > { %1030 = vmatpush3.bf16.msra.mxu0 %v1122_v1  ;;  %s349_s24 = sld [smem:[#allocation4]]  ;;  %s1235_s5 = smov 16   ;;  %1042 = vmatpush3.bf16.msra.mxu1 %v1126_v22  ;;  %v1129_v25 = vld [vmem:[%s1552_s3 + $0x18] sm:$0xff]   ;;  %v1130_v26 = vld [vmem:[%s1552_s3 + $0x20] sm:$0xff]   ;;  %v1131_v27 = vld [vmem:[%s1552_s3 + $0x28] sm:$0xff]  }
  0x3b   : > { %1031 = vmatprep.subr.bf16.mxu0 %v1233_v0  ;;  %s1014_s17 = sshll.u32 %s263_s12, 4  ;;  %s1236_s30 = smov 24   ;;  %1043 = vmatprep.subr.bf16.mxu1 %v1233_v0  ;;  %v1132_v28 = vld [vmem:[%s1552_s3 + $0x30] sm:$0xff]   ;;  %v1133_v29 = vld [vmem:[%s1552_s3 + $0x38] sm:$0xff]   ;;  %v368_v32 = vld [vmem:[#allocation5] sm:$0xff] }
  0x3c   : > { %s266_s20 = scalar_lea.vmem %s1549_s0, %s1014_s17  ;;  %s1237_s7 = smov 8   ;;  %v376_v33 = vld [vmem:[#allocation5 + $0x38] sm:$0xff]  ;;  %v384_v34 = vld [vmem:[#allocation5 + $0x70] sm:$0xff]  ;;  %v392_v41 = vld [vmem:[#allocation5 + $0xa8] sm:$0xff] }
  0x3d   : > { %v268_v5 = vld [vmem:[%s266_s20] sm:$0xff]  ;;  %v269_v6 = vld [vmem:[%s266_s20 + $0x8] sm:$0xff]  ;;  %s1238_s11 = smov 120   ;;  %s1239_s12 = smov 112   ;;  %v408_v45 = vld [vmem:[#allocation5 + $0x118] sm:$0xff] }
  0x3e   : > { %1032 = vmatpush3.bf16.msra.mxu0 %v1123_v2  ;;  %v270_v7 = vpack.c.bf16 %v269_v6, %v268_v5  ;;  %v354_v11 = vstv %s348_s23  ;;  %s1240_s13 = smov 104   ;;  %1044 = vmatpush3.bf16.msra.mxu1 %v1127_v23  ;;  %v400_v44 = vld [vmem:[#allocation5 + $0xe0] sm:$0xff]  ;;  %s259_s14 = sand.u32 1, %s1220_s26  }
  0x3f   : > { %1033 = vmatprep.subr.bf16.mxu0 %v1233_v0  ;;  %1045 = vmatprep.subr.bf16.mxu1 %v1233_v0  ;;  %s994_s15 = sshll.u32 %s259_s14, 3  ;;  %s1011_s16 = sshll.u32 %s1305_s4, 7 }
  0x40   : > { %v357_v16 = vstv %s349_s24  ;;  %s261_s17 = scalar_lea.vmem [#allocation8], %s994_s15  ;;  %s1506_s21 = scalar_lea.hbm %s1555_s6, %s1011_s16 }
  0x41   : > { %s917_s18 = sshll.u32 %s261_s17, 4  ;;  %s904_s22 = scalar_lea.sflag [#allocation7], %s259_s14  ;;  %s1508_s18 = int_to_ptr.vmem [resolvable:$true] %s917_s18 }
  0x42   : > { %1034 = vmatpush3.bf16.msra.mxu0 %v1124_v3  ;;  %1046 = vmatpush3.bf16.msra.mxu1 %v1128_v24  ;;  %s1162_s23 = scalar_lea.vmem %s1508_s18, 128  ;;  %p1566_p9 = scmp.ne.s32.totalorder %s1559_s9, 0 }
  0x43   : > { %1035 = vmatprep.subr.bf16.mxu0 %v1233_v0  ;;  %1047 = vmatprep.subr.bf16.mxu1 %v1233_v0  ;;  %p1163_p6 = scmp.ne.s32.totalorder %s1508_s18, %s1162_s23  ;;  %s1242_s4 = smov [#allocation8]  }
  0x44   : > { %s1166_s24 = sshll.u32 %s1242_s4, 4  ;;  %s1167_s24 = int_to_ptr.vmem [resolvable:$false] %s1166_s24 }
  0x45   : > { %p1164_p10 = pnand %p1163_p6, %p1566_p9  ;;  %p1169_p2 = scmp.lt.s32.totalorder %s1508_s18, %s1167_s24 }
  0x46   : > { %1036 = vmatpush3.bf16.msra.mxu0 %v1125_v4  ;;  %1048 = vmatpush3.bf16.msra.mxu1 %v1129_v25 }
  0x47   : > { %1049 = vmatprep.subr.bf16.mxu1 %v1233_v0  ;;  %p1165_p12 = pneg %p1164_p10 }
  0x49   : > { %1038 = vmatmul.mubr.msk.bf16.vlgmr.msra.gmra.mrb[0].mxu0 %vm303_vm1, %v270_v7 }
  0x4a   : > { %1050 = vmatpush3.bf16.msra.mxu1 %v1130_v26 }
  0x4b   : > { %1051 = vmatprep.subr.bf16.mxu1 %v1233_v0 }
  0x4e   : > { %1052 = vmatpush3.bf16.msra.mxu1 %v1131_v27 }
  0x4f   : > { %1053 = vmatprep.subr.bf16.mxu1 %v1233_v0 }
  0x52   : > { %1054 = vmatpush3.bf16.msra.mxu1 %v1132_v28 }
  0x53   : > { %1055 = vmatprep.subr.bf16.mxu1 %v1233_v0  ;;  %v416_v0 = vld [vmem:[#allocation5 + $0x150] sm:$0xff] }
  0x56   : > { %1056 = vmatpush3.bf16.msra.mxu1 %v1133_v29 }
 0x11c   : > { %v341_v8 = vpop.f32.mrb[0].mxu0 }
 0x11d   : > { %v350_v9 = vmax.f32 %v341_v8, 0.0  ;;  %v1039_v10 = vpop.f32.mrb[1].mxu0 }
 0x11e   : > { %v344_v12 = vpop.f32.mrb[2].mxu0  ;;  %v438_v10 = vld [vmem:[#allocation5 + $0x40] sm:$0xff] }
 0x11f   : > { %v352_v13 = vmul.f32 %v350_v9, %v350_v9  ;;  %v351_v14 = vmax.f32 %v344_v12, 0.0  ;;  %v1040_v15 = vpop.f32.mrb[3].mxu0  ;;  %v430_v9 = vld [vmem:[#allocation5 + $0x8] sm:$0xff] }
 0x121   : > { %v355_v17 = vmul.f32 %v354_v11, %v352_v13  ;;  %v353_v18 = vmul.f32 %v351_v14, %v351_v14  ;;  %v446_v14 = vld [vmem:[#allocation5 + $0x78] sm:$0xff] }
 0x123   : > { %v1394_v19 = vadd.f32 %v357_v16, %v355_v17  ;;  %v356_v20 = vmul.f32 %v354_v11, %v353_v18 }
 0x125   : > { %423 = vrot.lane.b32.xlu1 %v1394_v19, %s1235_s5  ;;  %362 = vrot.lane.b32.xlu0 %v1394_v19, %s1236_s30  ;;  %v1398_v21 = vadd.f32 %v357_v16, %v356_v20 }
 0x129   : > { %425 = vrot.lane.b32.xlu1 %v1398_v21, %s1235_s5  ;;  %364 = vrot.lane.b32.xlu0 %v1398_v21, %s1236_s30  ;;  %s1168_s5 = scalar_lea.vmem %s1167_s24, 256 }
 0x12a   : > { %p1170_p3 = scmp.lt.s32.totalorder %s1168_s5, %s1162_s23 }
 0x12c   : > { %p1171_p4 = por %p1170_p3, %p1169_p2 }
 0x12d   : > { %487 = vrot.lane.b32.xlu1 %v1398_v21, %s1237_s7  ;;  %485 = vrot.lane.b32.xlu0 %v1394_v19, %s1237_s7 }
 0x12e   : > { %p1172_p7 = pnand %p1171_p4, %p1165_p12 }
 0x131   : > { %607 = vrot.lane.b32.xlu1 %v1398_v21, %s1238_s11  ;;  %605 = vrot.lane.b32.xlu0 %v1394_v19, %s1238_s11 }
 0x135   : > { %669 = vrot.lane.b32.xlu1 %v1398_v21, %s1239_s12  ;;  %667 = vrot.lane.b32.xlu0 %v1394_v19, %s1239_s12 }
 0x139   : > { %731 = vrot.lane.b32.xlu1 %v1398_v21, %s1240_s13  ;;  %729 = vrot.lane.b32.xlu0 %v1394_v19, %s1240_s13  ;;  %s1241_s13 = smov 64  }
 0x197   : > { %v363_v30 = vpop.permute.xlu0 %362  ;;  %v1441_v35 = vpop.permute.xlu1 %423 }
 0x198   : > { %366 = vst [vmem:[#allocation2 + $0x8] sm:$0xff] %v363_v30  ;;  %v394_v50 = vmul.f32 %v392_v41, %v363_v30 }
 0x19b   : > { %v365_v31 = vpop.permute.xlu0 %364  ;;  %v426_v56 = vpop.permute.xlu1 %425 }
 0x19c   : > { %367 = vst [vmem:[#allocation2 + $0x10] sm:$0xff] %v365_v31  ;;  %v397_v2 = vmul.f32 %v392_v41, %v365_v31 }
 0x19f   : > { %v369_v36 = vld [vmem:[#allocation2 + $0x5] sm:$0xff] }
 0x1a0   : > { %v377_v37 = vld [vmem:[#allocation2 + $0x6] sm:$0xff]  ;;  %v370_v39 = vmul.f32 %v369_v36, %v368_v32 }
 0x1a1   : > { %v385_v38 = vld [vmem:[#allocation2 + $0x7] sm:$0xff]  ;;  %v378_v40 = vmul.f32 %v377_v37, %v376_v33  ;;  %v1444_v37 = vpop.permute.xlu1 %487 }
 0x1a2   : > { %v386_v43 = vmul.f32 %v385_v38, %v384_v34  ;;  %v486_v38 = vpop.permute.xlu0 %485 }
 0x1a3   : > { %v379_v42 = vadd.f32 %v378_v40, %v370_v39  ;;  %v372_v46 = vld [vmem:[#allocation2 + $0xd] sm:$0xff] }
 0x1a4   : > { %v380_v47 = vld [vmem:[#allocation2 + $0xe] sm:$0xff]  ;;  %v373_v51 = vmul.f32 %v372_v46, %v368_v32 }
 0x1a5   : > { %v388_v48 = vld [vmem:[#allocation2 + $0xf] sm:$0xff]  ;;  %v387_v49 = vadd.f32 %v386_v43, %v379_v42  ;;  %v381_v52 = vmul.f32 %v380_v47, %v376_v33 }
 0x1a6   : > { %v401_v53 = vld [vmem:[#allocation2 + $0x9] sm:$0xff]  ;;  %v404_v54 = vld [vmem:[#allocation2 + $0x11] sm:$0xff]  ;;  %v389_v62 = vmul.f32 %v388_v48, %v384_v34 }
 0x1a7   : > { %v409_v55 = vld [vmem:[#allocation2 + $0xa] sm:$0xff]  ;;  %v412_v57 = vld [vmem:[#allocation2 + $0x12] sm:$0xff]  ;;  %v395_v60 = vadd.f32 %v394_v50, %v387_v49  ;;  %v382_v61 = vadd.f32 %v381_v52, %v373_v51  ;;  %v402_v63 = vmul.f32 %v401_v53, %v400_v44  ;;  %v405_v6 = vmul.f32 %v404_v54, %v400_v44  ;;  %v470_v49 = vld [vmem:[#allocation5 + $0x120] sm:$0xff] }
 0x1a8   : > { %v417_v58 = vld [vmem:[#allocation2 + $0xb] sm:$0xff]  ;;  %v420_v59 = vld [vmem:[#allocation2 + $0x13] sm:$0xff]  ;;  %v410_v4 = vmul.f32 %v409_v55, %v408_v45  ;;  %v413_v12 = vmul.f32 %v412_v57, %v408_v45 }
 0x1a9   : > { %427 = vst [vmem:[#allocation2 + $0x8] sm:$0xff] %v1441_v35  ;;  %428 = vst [vmem:[#allocation2 + $0x10] sm:$0xff] %v426_v56  ;;  %v390_v1 = vadd.f32 %v389_v62, %v382_v61  ;;  %v403_v3 = vadd.f32 %v402_v63, %v395_v60  ;;  %v418_v8 = vmul.f32 %v417_v58, %v416_v0  ;;  %v454_v39 = vld [vmem:[#allocation5 + $0xb0] sm:$0xff]  ;;  %v462_v44 = vld [vmem:[#allocation5 + $0xe8] sm:$0xff] }
 0x1aa   : > { %v421_v20 = vmul.f32 %v420_v59, %v416_v0  ;;  %v456_v48 = vmul.f32 %v454_v39, %v1441_v35  ;;  %v459_v52 = vmul.f32 %v454_v39, %v426_v56  ;;  %v478_v54 = vld [vmem:[#allocation5 + $0x158] sm:$0xff]  ;;  %v492_v55 = vld [vmem:[#allocation5 + $0x10] sm:$0xff]  ;;  %v500_v0 = vld [vmem:[#allocation5 + $0x48] sm:$0xff] }
 0x1ab   : > { %v398_v5 = vadd.f32 %v397_v2, %v390_v1  ;;  %v411_v7 = vadd.f32 %v410_v4, %v403_v3 }
 0x1ad   : > { %v406_v11 = vadd.f32 %v405_v6, %v398_v5  ;;  %v419_v13 = vadd.f32 %v418_v8, %v411_v7 }
 0x1af   : > { %v414_v18 = vadd.f32 %v413_v12, %v406_v11 }
 0x1b0   : > { %v431_v15 = vld [vmem:[#allocation2 + $0x5] sm:$0xff]  ;;  %v434_v16 = vld [vmem:[#allocation2 + $0xd] sm:$0xff] }
 0x1b1   : > { %v439_v17 = vld [vmem:[#allocation2 + $0x6] sm:$0xff]  ;;  %v432_v22 = vmul.f32 %v431_v15, %v430_v9  ;;  %v442_v23 = vld [vmem:[#allocation2 + $0xe] sm:$0xff]  ;;  %v422_v29 = vadd.f32 %v421_v20, %v414_v18  ;;  %v435_v31 = vmul.f32 %v434_v16, %v430_v9 }
 0x1b2   : > { %v447_v24 = vld [vmem:[#allocation2 + $0x7] sm:$0xff]  ;;  %v450_v25 = vld [vmem:[#allocation2 + $0xf] sm:$0xff]  ;;  %v440_v32 = vmul.f32 %v439_v17, %v438_v10  ;;  %v443_v42 = vmul.f32 %v442_v23, %v438_v10  ;;  %v516_v23 = vld [vmem:[#allocation5 + $0xb8] sm:$0xff] }
 0x1b3   : > { %v463_v26 = vld [vmem:[#allocation2 + $0x9] sm:$0xff]  ;;  %v466_v27 = vld [vmem:[#allocation2 + $0x11] sm:$0xff]  ;;  %v433_v30 = vadd.f32 %v432_v22, %v419_v13  ;;  %v436_v40 = vadd.f32 %v435_v31, %v422_v29  ;;  %v448_v43 = vmul.f32 %v447_v24, %v446_v14  ;;  %v451_v47 = vmul.f32 %v450_v25, %v446_v14  ;;  %v508_v16 = vld [vmem:[#allocation5 + $0x80] sm:$0xff] }
 0x1b4   : > { %v471_v28 = vld [vmem:[#allocation2 + $0xa] sm:$0xff]  ;;  %v474_v33 = vld [vmem:[#allocation2 + $0x12] sm:$0xff]  ;;  %v464_v53 = vmul.f32 %v463_v26, %v462_v44  ;;  %v467_v59 = vmul.f32 %v466_v27, %v462_v44 }
 0x1b5   : > { %v479_v34 = vld [vmem:[#allocation2 + $0xb] sm:$0xff]  ;;  %v482_v36 = vld [vmem:[#allocation2 + $0x13] sm:$0xff]  ;;  %v441_v41 = vadd.f32 %v440_v32, %v433_v30  ;;  %v444_v45 = vadd.f32 %v443_v42, %v436_v40  ;;  %v472_v60 = vmul.f32 %v471_v28, %v470_v49  ;;  %v475_v5 = vmul.f32 %v474_v33, %v470_v49 }
 0x1b6   : > { %490 = vst [vmem:[#allocation2 + $0x10] sm:$0xff] %v1444_v37  ;;  %489 = vst [vmem:[#allocation2 + $0x8] sm:$0xff] %v486_v38  ;;  %v480_v6 = vmul.f32 %v479_v34, %v478_v54  ;;  %v483_v14 = vmul.f32 %v482_v36, %v478_v54  ;;  %v524_v28 = vld [vmem:[#allocation5 + $0xf0] sm:$0xff]  ;;  %v518_v32 = vmul.f32 %v516_v23, %v486_v38  ;;  %v532_v33 = vld [vmem:[#allocation5 + $0x128] sm:$0xff] }
 0x1b7   : > { %v449_v46 = vadd.f32 %v448_v43, %v441_v41  ;;  %v452_v50 = vadd.f32 %v451_v47, %v444_v45  ;;  %v540_v34 = vld [vmem:[#allocation5 + $0x160] sm:$0xff]  ;;  %v521_v43 = vmul.f32 %v516_v23, %v1444_v37 }
 0x1b9   : > { %v457_v51 = vadd.f32 %v456_v48, %v449_v46  ;;  %v460_v57 = vadd.f32 %v459_v52, %v452_v50  ;;  %v1453_v52 = vpop.permute.xlu0 %605 }
 0x1bb   : > { %v465_v58 = vadd.f32 %v464_v53, %v457_v51  ;;  %v468_v4 = vadd.f32 %v467_v59, %v460_v57  ;;  %v1451_v51 = vpop.permute.xlu1 %607 }
 0x1bd   : > { %v493_v61 = vld [vmem:[#allocation2 + $0x5] sm:$0xff]  ;;  %v496_v62 = vld [vmem:[#allocation2 + $0xd] sm:$0xff]  ;;  %v473_v35 = vadd.f32 %v472_v60, %v465_v58  ;;  %v476_v12 = vadd.f32 %v475_v5, %v468_v4  ;;  %v550_v60 = vld [vmem:[#allocation5 + $0x18] sm:$0xff] }
 0x1be   : > { %v501_v63 = vld [vmem:[#allocation2 + $0x6] sm:$0xff]  ;;  %v504_v1 = vld [vmem:[#allocation2 + $0xe] sm:$0xff]  ;;  %v494_v15 = vmul.f32 %v493_v61, %v492_v55  ;;  %v497_v20 = vmul.f32 %v496_v62, %v492_v55 }
 0x1bf   : > { %v509_v2 = vld [vmem:[#allocation2 + $0x7] sm:$0xff]  ;;  %v512_v3 = vld [vmem:[#allocation2 + $0xf] sm:$0xff]  ;;  %v481_v13 = vadd.f32 %v480_v6, %v473_v35  ;;  %v484_v17 = vadd.f32 %v483_v14, %v476_v12  ;;  %v502_v22 = vmul.f32 %v501_v63, %v500_v0  ;;  %v505_v26 = vmul.f32 %v504_v1, %v500_v0  ;;  %v582_v12 = vld [vmem:[#allocation5 + $0xf8] sm:$0xff] }
 0x1c0   : > { %v525_v7 = vld [vmem:[#allocation2 + $0x9] sm:$0xff]  ;;  %v528_v56 = vld [vmem:[#allocation2 + $0x11] sm:$0xff]  ;;  %v510_v27 = vmul.f32 %v509_v2, %v508_v16  ;;  %v513_v31 = vmul.f32 %v512_v3, %v508_v16 }
 0x1c1   : > { %v533_v8 = vld [vmem:[#allocation2 + $0xa] sm:$0xff]  ;;  %v536_v9 = vld [vmem:[#allocation2 + $0x12] sm:$0xff]  ;;  %v495_v18 = vadd.f32 %v494_v15, %v481_v13  ;;  %v498_v24 = vadd.f32 %v497_v20, %v484_v17  ;;  %v526_v44 = vmul.f32 %v525_v7, %v524_v28  ;;  %v529_v54 = vmul.f32 %v528_v56, %v524_v28 }
 0x1c2   : > { %v541_v10 = vld [vmem:[#allocation2 + $0xb] sm:$0xff]  ;;  %v544_v11 = vld [vmem:[#allocation2 + $0x13] sm:$0xff]  ;;  %v534_v55 = vmul.f32 %v533_v8, %v532_v33  ;;  %v537_v62 = vmul.f32 %v536_v9, %v532_v33  ;;  %v574_v8 = vld [vmem:[#allocation5 + $0xc0] sm:$0xff] }
 0x1c3   : > { %547 = vst [vmem:[#allocation2 + $0x8] sm:$0xff] %v1394_v19  ;;  %548 = vst [vmem:[#allocation2 + $0x10] sm:$0xff] %v1398_v21  ;;  %v503_v25 = vadd.f32 %v502_v22, %v495_v18  ;;  %v506_v29 = vadd.f32 %v505_v26, %v498_v24  ;;  %v542_v63 = vmul.f32 %v541_v10, %v540_v34  ;;  %v558_v0 = vld [vmem:[#allocation5 + $0x50] sm:$0xff]  ;;  %v566_v35 = vld [vmem:[#allocation5 + $0x88] sm:$0xff] }
 0x1c4   : > { %v545_v3 = vmul.f32 %v544_v11, %v540_v34  ;;  %v590_v10 = vld [vmem:[#allocation5 + $0x130] sm:$0xff]  ;;  %v576_v26 = vmul.f32 %v574_v8, %v1394_v19  ;;  %v579_v19 = vmul.f32 %v574_v8, %v1398_v21 }
 0x1c5   : > { %v511_v30 = vadd.f32 %v510_v27, %v503_v25  ;;  %v514_v41 = vadd.f32 %v513_v31, %v506_v29  ;;  %v1468_v31 = vpop.permute.xlu0 %667 }
 0x1c7   : > { %v519_v42 = vadd.f32 %v518_v32, %v511_v30  ;;  %v522_v38 = vadd.f32 %v521_v43, %v514_v41  ;;  %v1466_v30 = vpop.permute.xlu1 %669  ;;  %v598_v41 = vld [vmem:[#allocation5 + $0x168] sm:$0xff] }
 0x1c9   : > { %v527_v53 = vadd.f32 %v526_v44, %v519_v42  ;;  %v530_v37 = vadd.f32 %v529_v54, %v522_v38 }
 0x1ca   : > { %v551_v36 = vld [vmem:[#allocation2 + $0x5] sm:$0xff]  ;;  %v554_v39 = vld [vmem:[#allocation2 + $0xd] sm:$0xff] }
 0x1cb   : > { %v559_v40 = vld [vmem:[#allocation2 + $0x6] sm:$0xff]  ;;  %v562_v45 = vld [vmem:[#allocation2 + $0xe] sm:$0xff]  ;;  %v535_v61 = vadd.f32 %v534_v55, %v527_v53  ;;  %v538_v1 = vadd.f32 %v537_v62, %v530_v37  ;;  %v552_v4 = vmul.f32 %v551_v36, %v550_v60  ;;  %v555_v7 = vmul.f32 %v554_v39, %v550_v60  ;;  %v620_v55 = vld [vmem:[#allocation5 + $0x58] sm:$0xff] }
 0x1cc   : > { %v567_v46 = vld [vmem:[#allocation2 + $0x7] sm:$0xff]  ;;  %v570_v47 = vld [vmem:[#allocation2 + $0xf] sm:$0xff]  ;;  %v560_v56 = vmul.f32 %v559_v40, %v558_v0  ;;  %v563_v15 = vmul.f32 %v562_v45, %v558_v0 }
 0x1cd   : > { %v583_v48 = vld [vmem:[#allocation2 + $0x9] sm:$0xff]  ;;  %v586_v49 = vld [vmem:[#allocation2 + $0x11] sm:$0xff]  ;;  %v543_v2 = vadd.f32 %v542_v63, %v535_v61  ;;  %v546_v5 = vadd.f32 %v545_v3, %v538_v1  ;;  %v568_v16 = vmul.f32 %v567_v46, %v566_v35  ;;  %v571_v25 = vmul.f32 %v570_v47, %v566_v35  ;;  %v612_v46 = vld [vmem:[#allocation5 + $0x20] sm:$0xff] }
 0x1ce   : > { %v591_v50 = vld [vmem:[#allocation2 + $0xa] sm:$0xff]  ;;  %v594_v57 = vld [vmem:[#allocation2 + $0x12] sm:$0xff]  ;;  %v584_v40 = vmul.f32 %v583_v48, %v582_v12  ;;  %v587_v44 = vmul.f32 %v586_v49, %v582_v12 }
 0x1cf   : > { %v599_v58 = vld [vmem:[#allocation2 + $0xb] sm:$0xff]  ;;  %v602_v59 = vld [vmem:[#allocation2 + $0x13] sm:$0xff]  ;;  %v553_v6 = vadd.f32 %v552_v4, %v543_v2  ;;  %v556_v13 = vadd.f32 %v555_v7, %v546_v5  ;;  %v592_v45 = vmul.f32 %v591_v50, %v590_v10  ;;  %v595_v53 = vmul.f32 %v594_v57, %v590_v10  ;;  %v1479_v7 = vpop.permute.xlu1 %731 }
 0x1d0   : > { %609 = vst [vmem:[#allocation2 + $0x8] sm:$0xff] %v1453_v52  ;;  %610 = vst [vmem:[#allocation2 + $0x10] sm:$0xff] %v1451_v51  ;;  %v600_v54 = vmul.f32 %v599_v58, %v598_v41  ;;  %v603_v61 = vmul.f32 %v602_v59, %v598_v41  ;;  %v628_v48 = vld [vmem:[#allocation5 + $0x90] sm:$0xff]  ;;  %v636_v62 = vld [vmem:[#allocation5 + $0xc8] sm:$0xff] }
 0x1d1   : > { %v561_v14 = vadd.f32 %v560_v56, %v553_v6  ;;  %v564_v11 = vadd.f32 %v563_v15, %v556_v13  ;;  %v1481_v56 = vpop.permute.xlu0 %729 }
 0x1d3   : > { %v569_v24 = vadd.f32 %v568_v16, %v561_v14  ;;  %v572_v36 = vadd.f32 %v571_v25, %v564_v11  ;;  %v638_v11 = vmul.f32 %v636_v62, %v1453_v52 }
 0x1d5   : > { %v577_v39 = vadd.f32 %v576_v26, %v569_v24  ;;  %v580_v42 = vadd.f32 %v579_v19, %v572_v36  ;;  %v652_v24 = vld [vmem:[#allocation5 + $0x138] sm:$0xff]  ;;  %v660_v36 = vld [vmem:[#allocation5 + $0x170] sm:$0xff] }
 0x1d7   : > { %v613_v17 = vld [vmem:[#allocation2 + $0x5] sm:$0xff]  ;;  %v616_v18 = vld [vmem:[#allocation2 + $0xd] sm:$0xff]  ;;  %v585_v43 = vadd.f32 %v584_v40, %v577_v39  ;;  %v588_v47 = vadd.f32 %v587_v44, %v580_v42 }
 0x1d8   : > { %v621_v9 = vld [vmem:[#allocation2 + $0x6] sm:$0xff]  ;;  %v624_v20 = vld [vmem:[#allocation2 + $0xe] sm:$0xff]  ;;  %v614_v21 = vmul.f32 %v613_v17, %v612_v46  ;;  %v617_v4 = vmul.f32 %v616_v18, %v612_v46 }
 0x1d9   : > { %v629_v22 = vld [vmem:[#allocation2 + $0x7] sm:$0xff]  ;;  %v1457_v23 = vld [vmem:[#allocation2 + $0xf] sm:$0xff]  ;;  %v593_v38 = vadd.f32 %v592_v45, %v585_v43  ;;  %v596_v60 = vadd.f32 %v595_v53, %v588_v47  ;;  %v622_v49 = vmul.f32 %v621_v9, %v620_v55  ;;  %v625_v12 = vmul.f32 %v624_v20, %v620_v55 }
 0x1da   : > { %v1460_v27 = vld [vmem:[#allocation2 + $0x9] sm:$0xff]  ;;  %v1462_v28 = vld [vmem:[#allocation2 + $0x11] sm:$0xff]  ;;  %v630_v13 = vmul.f32 %v629_v22, %v628_v48  ;;  %v644_v17 = vld [vmem:[#allocation5 + $0x100] sm:$0xff]  ;;  %v633_v10 = vmul.f32 %v1457_v23, %v628_v48  ;;  %v641_v20 = vmul.f32 %v636_v62, %v1451_v51 }
 0x1db   : > { %v1464_v29 = vld [vmem:[#allocation2 + $0xa] sm:$0xff]  ;;  %v1470_v32 = vld [vmem:[#allocation2 + $0x12] sm:$0xff]  ;;  %v601_v37 = vadd.f32 %v600_v54, %v593_v38  ;;  %v604_v2 = vadd.f32 %v603_v61, %v596_v60  ;;  %v646_v22 = vmul.f32 %v1460_v27, %v644_v17  ;;  %v649_v40 = vmul.f32 %v1462_v28, %v644_v17  ;;  %v682_v45 = vld [vmem:[#allocation5 + $0x60] sm:$0xff] }
 0x1dc   : > { %v1472_v33 = vld [vmem:[#allocation2 + $0xb] sm:$0xff]  ;;  %v1474_v34 = vld [vmem:[#allocation2 + $0x13] sm:$0xff]  ;;  %v654_v41 = vmul.f32 %v1464_v29, %v652_v24  ;;  %v657_v23 = vmul.f32 %v1470_v32, %v652_v24 }
 0x1dd   : > { %671 = vst [vmem:[#allocation2 + $0x8] sm:$0xff] %v1468_v31  ;;  %672 = vst [vmem:[#allocation2 + $0x10] sm:$0xff] %v1466_v30  ;;  %v615_v3 = vadd.f32 %v614_v21, %v601_v37  ;;  %v618_v59 = vadd.f32 %v617_v4, %v604_v2  ;;  %v674_v42 = vld [vmem:[#allocation5 + $0x28] sm:$0xff]  ;;  %v662_v52 = vmul.f32 %v1472_v33, %v660_v36  ;;  %v690_v38 = vld [vmem:[#allocation5 + $0x98] sm:$0xff] }
 0x1de   : > { %v665_v51 = vmul.f32 %v1474_v34, %v660_v36  ;;  %v698_v60 = vld [vmem:[#allocation5 + $0xd0] sm:$0xff]  ;;  %v706_v48 = vld [vmem:[#allocation5 + $0x108] sm:$0xff] }
 0x1df   : > { %v623_v8 = vadd.f32 %v622_v49, %v615_v3  ;;  %v626_v18 = vadd.f32 %v625_v12, %v618_v59  ;;  %v700_v2 = vmul.f32 %v698_v60, %v1468_v31  ;;  %v714_v3 = vld [vmem:[#allocation5 + $0x140] sm:$0xff]  ;;  %v722_v59 = vld [vmem:[#allocation5 + $0x178] sm:$0xff] }
 0x1e1   : > { %v631_v9 = vadd.f32 %v630_v13, %v623_v8  ;;  %v634_v25 = vadd.f32 %v633_v10, %v626_v18  ;;  %v736_v13 = vld [vmem:[#allocation5 + $0x30] sm:$0xff]  ;;  %v744_v10 = vld [vmem:[#allocation5 + $0x68] sm:$0xff] }
 0x1e3   : > { %v639_v26 = vadd.f32 %v638_v11, %v631_v9  ;;  %v642_v39 = vadd.f32 %v641_v20, %v634_v25 }
 0x1e4   : > { %v675_v63 = vld [vmem:[#allocation2 + $0x5] sm:$0xff]  ;;  %v678_v0 = vld [vmem:[#allocation2 + $0xd] sm:$0xff] }
 0x1e5   : > { %v683_v1 = vld [vmem:[#allocation2 + $0x6] sm:$0xff]  ;;  %v686_v50 = vld [vmem:[#allocation2 + $0xe] sm:$0xff]  ;;  %v647_v19 = vadd.f32 %v646_v22, %v639_v26  ;;  %v650_v43 = vadd.f32 %v649_v40, %v642_v39  ;;  %v676_v27 = vmul.f32 %v675_v63, %v674_v42  ;;  %v679_v55 = vmul.f32 %v678_v0, %v674_v42 }
 0x1e6   : > { %v691_v35 = vld [vmem:[#allocation2 + $0x7] sm:$0xff]  ;;  %v694_v5 = vld [vmem:[#allocation2 + $0xf] sm:$0xff]  ;;  %v684_v28 = vmul.f32 %v683_v1, %v682_v45  ;;  %v687_v61 = vmul.f32 %v686_v50, %v682_v45  ;;  %v703_v63 = vmul.f32 %v698_v60, %v1466_v30 }
 0x1e7   : > { %v707_v6 = vld [vmem:[#allocation2 + $0x9] sm:$0xff]  ;;  %v710_v57 = vld [vmem:[#allocation2 + $0x11] sm:$0xff]  ;;  %v655_v44 = vadd.f32 %v654_v41, %v647_v19  ;;  %v658_v46 = vadd.f32 %v657_v23, %v650_v43  ;;  %v692_v21 = vmul.f32 %v691_v35, %v690_v38  ;;  %v695_v33 = vmul.f32 %v694_v5, %v690_v38  ;;  %v752_v26 = vld [vmem:[#allocation5 + $0xa0] sm:$0xff] }
 0x1e8   : > { %v715_v58 = vld [vmem:[#allocation2 + $0xa] sm:$0xff]  ;;  %v718_v14 = vld [vmem:[#allocation2 + $0x12] sm:$0xff]  ;;  %v708_v49 = vmul.f32 %v707_v6, %v706_v48  ;;  %v711_v8 = vmul.f32 %v710_v57, %v706_v48 }
 0x1e9   : > { %v723_v15 = vld [vmem:[#allocation2 + $0xb] sm:$0xff]  ;;  %v1483_v16 = vld [vmem:[#allocation2 + $0x13] sm:$0xff]  ;;  %v663_v47 = vadd.f32 %v662_v52, %v655_v44  ;;  %v666_v53 = vadd.f32 %v665_v51, %v658_v46  ;;  %v716_v12 = vmul.f32 %v715_v58, %v714_v3  ;;  %v719_v18 = vmul.f32 %v718_v14, %v714_v3 }
 0x1ea   : > { %733 = vst [vmem:[#allocation2 + $0x8] sm:$0xff] %v1481_v56  ;;  %734 = vst [vmem:[#allocation2 + $0x10] sm:$0xff] %v1479_v7  ;;  %v724_v9 = vmul.f32 %v723_v15, %v722_v59  ;;  %v727_v25 = vmul.f32 %v1483_v16, %v722_v59  ;;  %v760_v19 = vld [vmem:[#allocation5 + $0xd8] sm:$0xff]  ;;  %v768_v42 = vld [vmem:[#allocation5 + $0x110] sm:$0xff] }
 0x1eb   : > { %v677_v54 = vadd.f32 %v676_v27, %v663_v47  ;;  %v680_v29 = vadd.f32 %v679_v55, %v666_v53  ;;  %v762_v16 = vmul.f32 %v760_v19, %v1481_v56  ;;  %v776_v46 = vld [vmem:[#allocation5 + $0x148] sm:$0xff]  ;;  %v765_v38 = vmul.f32 %v760_v19, %v1479_v7 }
 0x1ed   : > { %v685_v37 = vadd.f32 %v684_v28, %v677_v54  ;;  %v688_v32 = vadd.f32 %v687_v61, %v680_v29 }
 0x1ef   : > { %v693_v62 = vadd.f32 %v692_v21, %v685_v37  ;;  %v696_v4 = vadd.f32 %v695_v33, %v688_v32  ;;  %v784_v37 = vld [vmem:[#allocation5 + $0x180] sm:$0xff] }
 0x1f1   : > { %v701_v34 = vadd.f32 %v700_v2, %v693_v62  ;;  %v704_v0 = vadd.f32 %v703_v63, %v696_v4  ;;  %v737_v50 = vld [vmem:[#allocation2 + $0x5] sm:$0xff]  ;;  %v740_v5 = vld [vmem:[#allocation2 + $0xd] sm:$0xff] }
 0x1f2   : > { %v745_v31 = vld [vmem:[#allocation2 + $0x6] sm:$0xff]  ;;  %v738_v30 = vmul.f32 %v737_v50, %v736_v13  ;;  %v748_v6 = vld [vmem:[#allocation2 + $0xe] sm:$0xff]  ;;  %v741_v58 = vmul.f32 %v740_v5, %v736_v13 }
 0x1f3   : > { %v709_v1 = vadd.f32 %v708_v49, %v701_v34  ;;  %v712_v35 = vadd.f32 %v711_v8, %v704_v0  ;;  %v753_v20 = vld [vmem:[#allocation2 + $0x7] sm:$0xff]  ;;  %v746_v36 = vmul.f32 %v745_v31, %v744_v10  ;;  %v756_v39 = vld [vmem:[#allocation2 + $0xf] sm:$0xff]  ;;  %v749_v15 = vmul.f32 %v748_v6, %v744_v10 }
 0x1f4   : > { %v754_v41 = vmul.f32 %v753_v20, %v752_v26  ;;  %v769_v43 = vld [vmem:[#allocation2 + $0x9] sm:$0xff]  ;;  %v757_v52 = vmul.f32 %v756_v39, %v752_v26  ;;  %v772_v45 = vld [vmem:[#allocation2 + $0x11] sm:$0xff] }
 0x1f5   : > { %v717_v17 = vadd.f32 %v716_v12, %v709_v1  ;;  %v720_v11 = vadd.f32 %v719_v18, %v712_v35  ;;  %v777_v47 = vld [vmem:[#allocation2 + $0xa] sm:$0xff]  ;;  %v770_v53 = vmul.f32 %v769_v43, %v768_v42  ;;  %v780_v54 = vld [vmem:[#allocation2 + $0x12] sm:$0xff]  ;;  %v773_v60 = vmul.f32 %v772_v45, %v768_v42 }
 0x1f6   : > { %v778_v29 = vmul.f32 %v777_v47, %v776_v46  ;;  %v785_v61 = vld [vmem:[#allocation2 + $0xb] sm:$0xff]  ;;  %v788_v21 = vld [vmem:[#allocation2 + $0x13] sm:$0xff]  ;;  %v781_v56 = vmul.f32 %v780_v54, %v776_v46 }
 0x1f7   : > { %v725_v24 = vadd.f32 %v724_v9, %v717_v17  ;;  %v728_v22 = vadd.f32 %v727_v25, %v720_v11  ;;  %v786_v33 = vmul.f32 %v785_v61, %v784_v37  ;;  %v789_v2 = vmul.f32 %v788_v21, %v784_v37 }
 0x1f9   : > { %v739_v57 = vadd.f32 %v738_v30, %v725_v24  ;;  %v742_v40 = vadd.f32 %v741_v58, %v728_v22 }
 0x1fb   : > { %v747_v14 = vadd.f32 %v746_v36, %v739_v57  ;;  %v750_v44 = vadd.f32 %v749_v15, %v742_v40 }
 0x1fd   : > { %v755_v23 = vadd.f32 %v754_v41, %v747_v14  ;;  %v758_v51 = vadd.f32 %v757_v52, %v750_v44 }
 0x1ff   : > { %v763_v27 = vadd.f32 %v762_v16, %v755_v23  ;;  %v766_v55 = vadd.f32 %v765_v38, %v758_v51 }
 0x201   : > { %v771_v28 = vadd.f32 %v770_v53, %v763_v27  ;;  %v774_v48 = vadd.f32 %v773_v60, %v766_v55 }
 0x203   : > { %v779_v32 = vadd.f32 %v778_v29, %v771_v28  ;;  %v782_v62 = vadd.f32 %v781_v56, %v774_v48 }
 0x205   : > { %v787_v3 = vadd.f32 %v786_v33, %v779_v32  ;;  %v790_v4 = vadd.f32 %v789_v2, %v782_v62 }
 0x207   : > { %v791_v7 = vpack.c.bf16 %v790_v4, %v787_v3 }
 0x209   : > { %1058 = vmatmul.mubr.bf16.vlgmr.msra.gmra.mrb[0].mxu1 %v791_v7 }
 0x2dc   : > { %v890_v34 = vpop.f32.mrb[0].mxu1 }
 0x2dd   : > { %v1059_v63 = vpop.f32.mrb[1].mxu1 }
 0x2de   : > { %v893_v49 = vpop.f32.mrb[2].mxu1 }
 0x2df   : > { %898 = vrot.lane.b32.xlu0 %v893_v49, %s1241_s13  ;;  %v1060_v59 = vpop.f32.mrb[3].mxu1 }
 0x351   : > { %v899_v0 = vpop.permute.xlu0 %898 }
 0x352   : > { %v901_v1 = vsel %vm303_vm1, %v890_v34, %v899_v0 }
 0x353   : > { %902 = vst [vmem:[%s261_s17] sm:$0xff] %v901_v1 }
 0x354   : > { %1175 = shalt.err (!%p1172_p7)
}
 0x355   : > { %s1176_s30 = scalar_lea.hbm %s1506_s21, 128  ;;  %s1180_s12 = scalar_lea.hbm %s1555_s6, 256 }
 0x356   : > { %p1177_p8 = scmp.ne.s32.totalorder %s1506_s21, %s1176_s30  ;;  %p1181_p1 = scmp.lt.u32.totalorder %s1506_s21, %s1555_s6 }
 0x357   : > { %p1182_p0 = scmp.lt.u32.totalorder %s1180_s12, %s1176_s30  ;;  %p1184_p6 = scmp.lt.u32.totalorder %s1176_s30, %s1506_s21 }
 0x358   : > { %p1178_p11 = pnand %p1177_p8, %p1566_p9 }
 0x359   : > { %p1183_p5 = por %p1182_p0, %p1181_p1 }
 0x35a   : > { %p1179_p13 = pneg %p1178_p11 }
 0x35b   : > { %p1185_p10 = por %p1184_p6, %p1183_p5 }
 0x35d   : > { %p1186_p12 = pnand %p1185_p10, %p1179_p13 }
 0x35f   : > { %1189 = shalt.err (!%p1186_p12)
}
 0x360   : > { %1065 = dma.vmem_to_hbm [thread:$0]  (%p1566_p9), %s1508_s18, 128, %s1506_s21, %s904_s22  }
 0x361 PF: > { %p1077_p2 = scmp.ge.s32.totalorder %s1228_s28, 2  ;;  %s929_s15 = sand.u32 1, %s1216_s25  }
 0x362   : > { %p1567_p3 = scmp.ne.s32.totalorder %s1560_s10, 0  ;;  %s930_s16 = scalar_lea.sflag [#allocation7], %s929_s15 }
 0x364   : > { %p1072_p4 = pnand %p1077_p2, %p1567_p3 }
 0x366   : > { %1211 = dma.done.wait (!%p1072_p4), %s930_s16, 128  }
 0x367   : > { %1213 = vsyncadd (!%p1072_p4), %s930_s16, 4294967168  ;;  %p19_p7 = scmp.ge.s32.totalorder %s1309_s29, 4   ;;  %s1568_s25 = smov %s1220_s26 }
 0x368   : > { %s1569_s26 = smov %s1224_s27  ;;  %s1570_s27 = smov %s1320_s8 }
 0x369   : > { %s1571_s28 = smov %s1309_s29  ;;  %21 = sbr.rel (!%p19_p7) target bundleno = 7 (0x7), region = 132 }
 0x370   :  { %935 = vsyncpa [#allocation6], 1 }
 0x371   :  { %937 = vsyncpa [#allocation6 + $0x1], 1 }
 0x372   :  { %938 = vsyncpa [#allocation7], 1 }
 0x373   :  { %940 = vsyncpa [#allocation7 + $0x1], 1 }

</bundles_post_ra>
